<compile_context>
chip_gen: v5e
topology: v5e:2x2
jax: 0.10.0
libtpu: 0.0.40
codegen_flags: <defaults>
</compile_context>

<pallas_src>
import math
import functools

import jax
import jax.numpy as jnp
from jax import lax
from jax.experimental import pallas as pl
from jax.experimental.pallas import tpu as pltpu


# ----------------------------- config ---------------------------------------
class Config:
    vocab_size = 64
    d_model = 32
    d_ff = 64
    num_heads = 4
    encoder_layers = 2
    dropout_rate = 0.0                       # dropout == identity
    relative_attention_num_buckets = 32
    use_relative_attention_bias = True


_NEG = -1.0e9


# ----------------------------- Pallas kernels -------------------------------
def _encoder_layer_kernel(x_ref, ln1g_ref, ln1b_ref,
                          wqkv_ref, bqkv_ref,
                          wug_ref, bug_ref, wdnt_ref, bdnt_ref,
                          brow_ref, bcol_ref, padk_ref, mcol_ref, pmat_ref,
                          wo_ref, bo_ref, ln2g_ref, ln2b_ref,
                          w1_ref, b1_ref, w2_ref, b2_ref,
                          y_ref, ent_ref,
                          *, num_heads, d_head, scale):
    """Whole encoder layer for one batch element (grid is over batch)."""
    del d_head  # implicit in the head-major weight layout
    H = num_heads
    x = x_ref[...]                                         # (S, D) f32
    S, D = x.shape

    # ---- LayerNorm 1 (eps=1e-6), f32
    mu = jnp.mean(x, axis=-1, keepdims=True)
    var = jnp.mean(jnp.square(x - mu), axis=-1, keepdims=True)
    nx = (x - mu) * lax.rsqrt(var + 1e-6) * ln1g_ref[...] + ln1b_ref[...]
    nxb = nx.astype(jnp.bfloat16)

    # ---- head-batched fused QKV projection -> (3H, S, Dh) directly (no transpose)
    G = 3 * H
    nxg = jnp.broadcast_to(nxb[None, :, :], (G, S, D))
    qkv = lax.dot_general(nxg, wqkv_ref[...], (((2,), (1,)), ((0,), (0,))),
                          preferred_element_type=jnp.float32) + bqkv_ref[...]
    qkvb = qkv.astype(jnp.bfloat16)
    qb = qkvb[:H]                                          # (H, S, Dh)
    kb = qkvb[H:2 * H]
    vb = qkvb[2 * H:]

    # ---- column view: permute K and V only (queries stay in original order)
    P = pmat_ref[...]                                      # (S, S) bf16 one-hot rows
    kvp = lax.dot_general(jnp.broadcast_to(P[None, :, :], (2 * H, S, S)), qkvb[H:],
                          (((2,), (1,)), ((0,), (0,))),
                          preferred_element_type=jnp.float32)
    kvpb = kvp.astype(jnp.bfloat16)                        # exact: P is a permutation
    kpb = kvpb[:H]
    vpb = kvpb[H:]

    def attn(k_b, v_b, bias_bf16, mask_f32):
        # scores / mask / softmax in f32; exact masked_fill(mask==0, -1e9) semantics.
        s = lax.dot_general(qb, k_b, (((2,), (2,)), ((0,), (0,))),
                            preferred_element_type=jnp.float32) * scale   # (H, S, S)
        s = s + bias_bf16.astype(jnp.float32)
        s = jnp.where(mask_f32 > 0.5, s, _NEG)
        m = jnp.max(s, axis=-1, keepdims=True)
        e = jnp.exp(s - m)
        p = e * pl.reciprocal(jnp.sum(e, axis=-1, keepdims=True), approx=True)
        return lax.dot_general(p.astype(jnp.bfloat16), v_b,
                               (((2,), (1,)), ((0,), (0,))),
                               preferred_element_type=jnp.float32)        # (H, S, Dh)

    ctx_row = attn(kb, vb, brow_ref[...], padk_ref[...][None, :, :])
    ctx_col = attn(kpb, vpb, bcol_ref[...], mcol_ref[...][None, :, :])

    # ---- routing MLP (fused up/gate; down-proj transposed + head-major -> (2H, S))
    ug = jnp.dot(nxb, wug_ref[...], preferred_element_type=jnp.float32) + bug_ref[...]
    hid = ug.shape[-1] // 2
    up = ug[:, :hid]
    gate = ug[:, hid:]
    act = up * jax.nn.sigmoid(up) * gate                   # SiLU(up) * gate, f32
    logits = lax.dot_general(wdnt_ref[...], act.astype(jnp.bfloat16),
                             (((1,), (1,)), ((), ())),
                             preferred_element_type=jnp.float32) + bdnt_ref[...]
    l0 = logits[:H]                                        # (H, S) row-view logits
    l1 = logits[H:]                                        # (H, S) col-view logits
    mx = jnp.maximum(l0, l1)
    e0 = jnp.exp(l0 - mx)
    e1 = jnp.exp(l1 - mx)
    inv_z = pl.reciprocal(e0 + e1, approx=True)
    w0 = e0 * inv_z
    w1 = e1 * inv_z
    ent = -(w0 * jnp.log(w0 + 1e-9) + w1 * jnp.log(w1 + 1e-9))   # (H, S)
    ent_ref[...] = jnp.sum(jnp.sum(ent, axis=1, keepdims=True), axis=0, keepdims=True)

    # ---- routing-weighted combine + output projection (concat folded into head sum)
    ctx = w0[:, :, None] * ctx_row + w1[:, :, None] * ctx_col   # (H, S, Dh)
    part = lax.dot_general(ctx.astype(jnp.bfloat16), wo_ref[...],
                           (((2,), (1,)), ((0,), (0,))),
                           preferred_element_type=jnp.float32)  # (H, S, D)
    attn_out = jnp.sum(part, axis=0) + bo_ref[...]              # (S, D)
    x1 = x + attn_out

    # ---- LayerNorm 2 + FFN + residual (fused)
    mu2 = jnp.mean(x1, axis=-1, keepdims=True)
    var2 = jnp.mean(jnp.square(x1 - mu2), axis=-1, keepdims=True)
    nx2 = (x1 - mu2) * lax.rsqrt(var2 + 1e-6) * ln2g_ref[...] + ln2b_ref[...]
    hmid = jnp.maximum(
        jnp.dot(nx2.astype(jnp.bfloat16), w1_ref[...],
                preferred_element_type=jnp.float32) + b1_ref[...], 0.0)
    ffn = jnp.dot(hmid.astype(jnp.bfloat16), w2_ref[...],
                  preferred_element_type=jnp.float32) + b2_ref[...]
    y_ref[...] = x1 + ffn


def _layernorm_kernel(x_ref, g_ref, b_ref, o_ref):
    x = x_ref[...]
    mu = jnp.mean(x, axis=-1, keepdims=True)
    var = jnp.mean(jnp.square(x - mu), axis=-1, keepdims=True)
    o_ref[...] = (x - mu) * lax.rsqrt(var + 1e-6) * g_ref[...] + b_ref[...]


def layer_norm(x, gamma, beta):
    """Final layer norm (single small pallas_call for the whole model)."""
    *lead, D = x.shape
    M = 1
    for d in lead:
        M *= d
    out = pl.pallas_call(
        _layernorm_kernel,
        out_shape=jax.ShapeDtypeStruct((M, D), jnp.float32),
        grid=(1,),
        in_specs=[pl.BlockSpec((M, D), lambda i: (0, 0)),
                  pl.BlockSpec((1, D), lambda i: (0, 0)),
                  pl.BlockSpec((1, D), lambda i: (0, 0))],
        out_specs=pl.BlockSpec((M, D), lambda i: (0, 0)),
    )(x.reshape(M, D), gamma.reshape(1, D), beta.reshape(1, D))
    return out.reshape(*lead, D)


# ----------------------------- fused layer wrapper ---------------------------
def encoder_layer(x, lp, cfg, bias_row_b, bias_col_b, pad_row, mask_col, pmat_b):
    B, S, D = x.shape
    H = cfg.num_heads
    Dh = D // H
    F = lp['w1'].shape[1]
    HID2 = lp['wug'].shape[1]          # 2 * hidden_dim
    HID = HID2 // 2
    bf = jnp.bfloat16

    kern = functools.partial(_encoder_layer_kernel,
                             num_heads=H, d_head=Dh, scale=1.0 / math.sqrt(Dh))

    def rep(shape):                    # grid-invariant weight block
        nd = len(shape)
        return pl.BlockSpec(shape, lambda b, _nd=nd: (0,) * _nd)

    y, ent = pl.pallas_call(
        kern,
        out_shape=(jax.ShapeDtypeStruct((B, S, D), jnp.float32),
                   jax.ShapeDtypeStruct((B, 1, 1), jnp.float32)),
        grid=(B,),
        in_specs=[
            pl.BlockSpec((None, S, D), lambda b: (b, 0, 0)),            # x
            rep((1, D)), rep((1, D)),                                   # ln1 gamma/beta
            rep((3 * H, D, Dh)), rep((3 * H, 1, Dh)),                   # head-major QKV
            rep((D, HID2)), rep((1, HID2)),                             # routing up/gate
            rep((2 * H, HID)), rep((2 * H, 1)),                         # routing down (T, head-major)
            pl.BlockSpec((None, H, S, S), lambda b: (b, 0, 0, 0)),      # row bias (bf16)
            pl.BlockSpec((None, H, S, S), lambda b: (b, 0, 0, 0)),      # col bias (bf16)
            pl.BlockSpec((None, 1, S), lambda b: (b, 0, 0)),            # key-pad mask (row view)
            pl.BlockSpec((None, S, S), lambda b: (b, 0, 0)),            # col-view mask
            pl.BlockSpec((None, S, S), lambda b: (b, 0, 0)),            # permutation one-hot (bf16)
            rep((H, Dh, D)), rep((1, D)),                               # o_proj (head-major) + bias
            rep((1, D)), rep((1, D)),                                   # ln2 gamma/beta
            rep((D, F)), rep((1, F)),                                   # ffn dense1
            rep((F, D)), rep((1, D)),                                   # ffn dense2
        ],
        out_specs=(pl.BlockSpec((None, S, D), lambda b: (b, 0, 0)),
                   pl.BlockSpec((None, 1, 1), lambda b: (b, 0, 0))),
        compiler_params=pltpu.CompilerParams(
            dimension_semantics=("parallel",)),
    )(x,
      lp['ln1_g'].reshape(1, D), lp['ln1_b'].reshape(1, D),
      lp['wqkv_h'].astype(bf), lp['bqkv_h'],
      lp['wug'].astype(bf), lp['bug'].reshape(1, HID2),
      lp['wdnt'].astype(bf), lp['bdnt'].reshape(2 * H, 1),
      bias_row_b, bias_col_b, pad_row, mask_col, pmat_b,
      lp['wo_h'].astype(bf), lp['bo'].reshape(1, D),
      lp['ln2_g'].reshape(1, D), lp['ln2_b'].reshape(1, D),
      lp['w1'].astype(bf), lp['b1'].reshape(1, F),
      lp['w2'].astype(bf), lp['b2'].reshape(1, D))

    entropy_loss = jnp.sum(ent) / jnp.float32(B * S * H)   # mean over (B, S, H)
    return y, entropy_loss


# ----------------------------- JAX glue (hoisted, once per forward) ----------
def relative_position_bucket(relative_position, num_buckets, max_distance=128):
    n = -relative_position
    num_buckets = num_buckets // 2
    ret = (n < 0).astype(jnp.int32) * num_buckets
    n = jnp.abs(n)
    max_exact = num_buckets // 2
    is_small = n < max_exact
    n_f = jnp.maximum(n, 1).astype(jnp.float32)
    val_if_large = max_exact + (jnp.log(n_f / max_exact) /
                                math.log(max_distance / max_exact) *
                                (num_buckets - max_exact)).astype(jnp.int32)
    val_if_large = jnp.minimum(val_if_large, num_buckets - 1)
    return ret + jnp.where(is_small, n, val_if_large)


def compute_rel_bias(q_pos, k_pos, emb_table, num_buckets):
    rel = k_pos[:, None, :] - q_pos[:, :, None]              # (B, Sq, Sk)
    bucket = relative_position_bucket(rel, num_buckets)
    values = emb_table[bucket]                               # (B, Sq, Sk, H)
    return jnp.transpose(values, (0, 3, 1, 2))               # (B, H, Sq, Sk)


@functools.partial(jax.jit, static_argnums=(1,))
def byt5_encoder(params, cfg, input_ids, attention_mask, position_indices):
    B, S = input_ids.shape
    pad = attention_mask.astype(jnp.float32)                 # (B, S)
    abs_row = position_indices[..., 0]
    abs_col = position_indices[..., 1]
    nb = cfg.relative_attention_num_buckets

    # --- row-view rel-pos bias (shared by all layers), key-padding mask separate
    bias_row_b = compute_rel_bias(abs_row, abs_row, params['rel_emb'], nb
                                  ).astype(jnp.bfloat16)                  # (B,H,S,S)
    pad_row = pad[:, None, :]                                             # (B,1,S)

    # --- column-view permutation machinery (positions & mask only; layer-invariant)
    max_val = jnp.max(abs_row, axis=1, keepdims=True) + 1
    composite = abs_col * max_val + abs_row
    perm = jnp.argsort(composite, axis=1)                                 # (B, S)
    inv_perm = jnp.argsort(perm, axis=1)                                  # inverse perm
    pmat_b = jnp.eye(S, dtype=jnp.float32)[perm].astype(jnp.bfloat16)     # (B, S, S)
    perm_col_pos = jnp.take_along_axis(abs_col, perm, axis=1)
    # Column-view bias with query rows already in ORIGINAL order:
    #   bias_perm[inv_perm[s], j] == rel_bias(q=abs_col[s], k=perm_col_pos[j]),
    # so the kernel needs no pmat_inv and no context un-permute.
    bias_col_b = compute_rel_bias(abs_col, perm_col_pos, params['rel_emb'], nb
                                  ).astype(jnp.bfloat16)                  # (B,H,S,S)
    perm_pad = jnp.take_along_axis(pad, perm, axis=1)
    mask_col = ((jnp.arange(S, dtype=jnp.int32)[None, None, :] <= inv_perm[:, :, None])
                .astype(jnp.float32) * perm_pad[:, None, :])              # (B, S, S)

    # --- embedding + layers (one fused Pallas kernel per layer)
    x = params['embed'][input_ids]
    total_ent = jnp.float32(0.0)
    for lp in params['layers']:
        x, ent = encoder_layer(x, lp, cfg, bias_row_b, bias_col_b,
                               pad_row, mask_col, pmat_b)
        total_ent = total_ent + ent
    x = layer_norm(x, params['lnf_g'], params['lnf_b'])
    return x, total_ent


# ----------------------------- parameter init --------------------------------
def init_params(cfg, key):
    D, F, H = cfg.d_model, cfg.d_ff, cfg.num_heads
    Dh = D // H
    HID = D * 4

    def nrm(k, shape, scale=0.02):
        return scale * jax.random.normal(k, shape, jnp.float32)

    keys = jax.random.split(key, 2 + cfg.encoder_layers)
    params = {
        'embed': nrm(keys[0], (cfg.vocab_size, D), 1.0),
        'rel_emb': nrm(keys[1], (cfg.relative_attention_num_buckets, H)),
        'lnf_g': jnp.ones((D,), jnp.float32),
        'lnf_b': jnp.zeros((D,), jnp.float32),
        'layers': [],
    }
    for li in range(cfg.encoder_layers):
        lk = jax.random.split(keys[2 + li], 12)
        lp = {
            'ln1_g': jnp.ones((D,), jnp.float32), 'ln1_b': jnp.zeros((D,), jnp.float32),
            'ln2_g': jnp.ones((D,), jnp.float32), 'ln2_b': jnp.zeros((D,), jnp.float32),
            # head-major fused q/k/v: wqkv_h[kind*H + h] == W_kind[:, h*Dh:(h+1)*Dh]
            # (equivalent to the three nn.Linear(D, D) of the reference)
            'wqkv_h': nrm(lk[0], (3 * H, D, Dh)), 'bqkv_h': nrm(lk[1], (3 * H, 1, Dh)),
            # fused routing up/gate (two nn.Linear(D, 4D))
            'wug': nrm(lk[2], (D, 2 * HID)), 'bug': nrm(lk[3], (2 * HID,)),
            # routing down_proj, transposed and column-permuted to head-major layout
            # (rows 0..H-1 -> row-view logits, rows H..2H-1 -> col-view logits)
            'wdnt': nrm(lk[4], (2 * H, HID)), 'bdnt': nrm(lk[5], (2 * H,)),
            # o_proj reshaped head-major: wo_h[h] == W_o[h*Dh:(h+1)*Dh, :]
            'wo_h': nrm(lk[6], (H, Dh, D)), 'bo': nrm(lk[7], (D,)),
            'w1': nrm(lk[8], (D, F)), 'b1': jnp.zeros((F,), jnp.float32),
            'w2': nrm(lk[9], (F, D)), 'b2': jnp.zeros((D,), jnp.float32),
        }
        params['layers'].append(lp)
    return params


# ----------------------------- main ------------------------------------------
if __name__ == "__main__":
    cfg = Config()
    key = jax.random.PRNGKey(0)
    kp, kid, kr, kc = jax.random.split(key, 4)
    params = init_params(cfg, kp)

    B, S = 2, 8
    input_ids = jax.random.randint(kid, (B, S), 0, cfg.vocab_size, jnp.int32)
    attention_mask = jnp.ones((B, S), jnp.float32).at[1, -2:].set(0.0)
    # 2D (row, col) positions: random permutations per batch so the permuted
    # column-view attention path is nontrivial.
    row_pos = jnp.stack([jax.random.permutation(jax.random.fold_in(kr, b), S)
                         for b in range(B)]).astype(jnp.int32)
    col_pos = jnp.stack([jax.random.permutation(jax.random.fold_in(kc, b), S)
                         for b in range(B)]).astype(jnp.int32)
    position_indices = jnp.stack([row_pos, col_pos], axis=-1)          # (B, S, 2)

    out, ent_loss = byt5_encoder(params, cfg, input_ids, attention_mask, position_indices)
    out = jax.block_until_ready(out)
    ent_loss = jax.block_until_ready(ent_loss)

    assert out.shape == (B, S, cfg.d_model)
    assert bool(jnp.all(jnp.isfinite(out))) and bool(jnp.isfinite(ent_loss))
    print("KERNEL_OK")
</pallas_src>

<mosaic_0001>
module attributes {stable_mosaic.version = 11 : i64} {
  func.func @_layernorm_kernel(%arg0: i32, %arg1: memref<16x32xf32, #tpu.memory_space<vmem>>, %arg2: memref<1x32xf32, #tpu.memory_space<vmem>>, %arg3: memref<1x32xf32, #tpu.memory_space<vmem>>, %arg4: memref<16x32xf32, #tpu.memory_space<vmem>>) attributes {dimension_semantics = [#tpu.dimension_semantics<arbitrary>], iteration_bounds = array<i64: 1>, scalar_prefetch = 0 : i64, scratch_operands = 0 : i64, tpu.core_type = #tpu.core_type<tc>, window_params = [{pipeline_mode = #tpu.pipeline_mode<synchronous>, transform_indices = @transform_0, window_bounds = array<i64: 16, 32>}, {pipeline_mode = #tpu.pipeline_mode<synchronous>, transform_indices = @transform_1, window_bounds = array<i64: 1, 32>}, {pipeline_mode = #tpu.pipeline_mode<synchronous>, transform_indices = @transform_2, window_bounds = array<i64: 1, 32>}, {pipeline_mode = #tpu.pipeline_mode<synchronous>, transform_indices = @transform_3, window_bounds = array<i64: 16, 32>}]} {
    %c0 = arith.constant 0 : index
    %c0_0 = arith.constant 0 : index
    %0 = vector.load %arg1[%c0, %c0_0] : memref<16x32xf32, #tpu.memory_space<vmem>>, vector<16x32xf32>
    %cst = arith.constant dense<0.000000e+00> : vector<16xf32>
    %1 = vector.multi_reduction <add>, %0, %cst [1] : vector<16x32xf32> to vector<16xf32>
    %2 = vector.shape_cast %1 : vector<16xf32> to vector<16x1xf32>
    %cst_1 = arith.constant 3.200000e+01 : f32
    %3 = vector.broadcast %cst_1 : f32 to vector<16x1xf32>
    %4 = arith.divf %2, %3 : vector<16x1xf32>
    %5 = vector.broadcast %4 : vector<16x1xf32> to vector<16x32xf32>
    %6 = arith.subf %0, %5 : vector<16x32xf32>
    %7 = arith.mulf %6, %6 : vector<16x32xf32>
    %cst_2 = arith.constant dense<0.000000e+00> : vector<16xf32>
    %8 = vector.multi_reduction <add>, %7, %cst_2 [1] : vector<16x32xf32> to vector<16xf32>
    %9 = vector.shape_cast %8 : vector<16xf32> to vector<16x1xf32>
    %cst_3 = arith.constant 3.200000e+01 : f32
    %10 = vector.broadcast %cst_3 : f32 to vector<16x1xf32>
    %11 = arith.divf %9, %10 : vector<16x1xf32>
    %12 = vector.broadcast %4 : vector<16x1xf32> to vector<16x32xf32>
    %13 = arith.subf %0, %12 : vector<16x32xf32>
    %cst_4 = arith.constant 9.99999997E-7 : f32
    %14 = vector.broadcast %cst_4 : f32 to vector<16x1xf32>
    %15 = arith.addf %11, %14 : vector<16x1xf32>
    %16 = math.rsqrt %15 : vector<16x1xf32>
    %17 = vector.broadcast %16 : vector<16x1xf32> to vector<16x32xf32>
    %18 = arith.mulf %13, %17 : vector<16x32xf32>
    %c0_5 = arith.constant 0 : index
    %c0_6 = arith.constant 0 : index
    %19 = vector.load %arg2[%c0_5, %c0_6] : memref<1x32xf32, #tpu.memory_space<vmem>>, vector<1x32xf32>
    %20 = vector.broadcast %19 : vector<1x32xf32> to vector<16x32xf32>
    %21 = arith.mulf %18, %20 : vector<16x32xf32>
    %c0_7 = arith.constant 0 : index
    %c0_8 = arith.constant 0 : index
    %22 = vector.load %arg3[%c0_7, %c0_8] : memref<1x32xf32, #tpu.memory_space<vmem>>, vector<1x32xf32>
    %23 = vector.broadcast %22 : vector<1x32xf32> to vector<16x32xf32>
    %24 = arith.addf %21, %23 : vector<16x32xf32>
    %c0_9 = arith.constant 0 : index
    %c0_10 = arith.constant 0 : index
    %25 = vector.load %arg4[%c0_9, %c0_10] : memref<16x32xf32, #tpu.memory_space<vmem>>, vector<16x32xf32>
    tpu.vector_store %arg4[%c0_9, %c0_10], %24 {strides = array<i32>} : memref<16x32xf32, #tpu.memory_space<vmem>>, vector<16x32xf32>,
    return
  }
  func.func @transform_0(%arg0: i32) -> (i32, i32) {
    %c0_i32 = arith.constant 0 : i32
    %c0_i32_0 = arith.constant 0 : i32
    %c0_i32_1 = arith.constant 0 : i32
    return %c0_i32, %c0_i32_0 : i32, i32
  }
  func.func @transform_1(%arg0: i32) -> (i32, i32) {
    %c0_i32 = arith.constant 0 : i32
    %c0_i32_0 = arith.constant 0 : i32
    %c0_i32_1 = arith.constant 0 : i32
    return %c0_i32, %c0_i32_0 : i32, i32
  }
  func.func @transform_2(%arg0: i32) -> (i32, i32) {
    %c0_i32 = arith.constant 0 : i32
    %c0_i32_0 = arith.constant 0 : i32
    %c0_i32_1 = arith.constant 0 : i32
    return %c0_i32, %c0_i32_0 : i32, i32
  }
  func.func @transform_3(%arg0: i32) -> (i32, i32) {
    %c0_i32 = arith.constant 0 : i32
    %c0_i32_0 = arith.constant 0 : i32
    %c0_i32_1 = arith.constant 0 : i32
    return %c0_i32, %c0_i32_0 : i32, i32
  }
}

module attributes {stable_mosaic.version = 11 : i64} {
  func.func @_encoder_layer_kernel(%arg0: i32, %arg1: memref<1x8x32xf32, #tpu.memory_space<vmem>>, %arg2: memref<1x32xf32, #tpu.memory_space<vmem>>, %arg3: memref<1x32xf32, #tpu.memory_space<vmem>>, %arg4: memref<12x32x8xbf16, #tpu.memory_space<vmem>>, %arg5: memref<12x1x8xf32, #tpu.memory_space<vmem>>, %arg6: memref<32x256xbf16, #tpu.memory_space<vmem>>, %arg7: memref<1x256xf32, #tpu.memory_space<vmem>>, %arg8: memref<8x128xbf16, #tpu.memory_space<vmem>>, %arg9: memref<8x1xf32, #tpu.memory_space<vmem>>, %arg10: memref<1x4x8x8xbf16, #tpu.memory_space<vmem>>, %arg11: memref<1x4x8x8xbf16, #tpu.memory_space<vmem>>, %arg12: memref<1x1x8xf32, #tpu.memory_space<vmem>>, %arg13: memref<1x8x8xf32, #tpu.memory_space<vmem>>, %arg14: memref<1x8x8xbf16, #tpu.memory_space<vmem>>, %arg15: memref<4x8x32xbf16, #tpu.memory_space<vmem>>, %arg16: memref<1x32xf32, #tpu.memory_space<vmem>>, %arg17: memref<1x32xf32, #tpu.memory_space<vmem>>, %arg18: memref<1x32xf32, #tpu.memory_space<vmem>>, %arg19: memref<32x64xbf16, #tpu.memory_space<vmem>>, %arg20: memref<1x64xf32, #tpu.memory_space<vmem>>, %arg21: memref<64x32xbf16, #tpu.memory_space<vmem>>, %arg22: memref<1x32xf32, #tpu.memory_space<vmem>>, %arg23: memref<1x8x32xf32, #tpu.memory_space<vmem>>, %arg24: memref<1x1x1xf32, #tpu.memory_space<vmem>>) attributes {dimension_semantics = [#tpu.dimension_semantics<parallel>], iteration_bounds = array<i64: 2>, scalar_prefetch = 0 : i64, scratch_operands = 0 : i64, tpu.core_type = #tpu.core_type<tc>, window_params = [{transform_indices = @transform_0, window_bounds = array<i64: 1, 8, 32>}, {pipeline_mode = #tpu.pipeline_mode<synchronous>, transform_indices = @transform_1, window_bounds = array<i64: 1, 32>}, {pipeline_mode = #tpu.pipeline_mode<synchronous>, transform_indices = @transform_2, window_bounds = array<i64: 1, 32>}, {pipeline_mode = #tpu.pipeline_mode<synchronous>, transform_indices = @transform_3, window_bounds = array<i64: 12, 32, 8>}, {pipeline_mode = #tpu.pipeline_mode<synchronous>, transform_indices = @transform_4, window_bounds = array<i64: 12, 1, 8>}, {pipeline_mode = #tpu.pipeline_mode<synchronous>, transform_indices = @transform_5, window_bounds = array<i64: 32, 256>}, {pipeline_mode = #tpu.pipeline_mode<synchronous>, transform_indices = @transform_6, window_bounds = array<i64: 1, 256>}, {pipeline_mode = #tpu.pipeline_mode<synchronous>, transform_indices = @transform_7, window_bounds = array<i64: 8, 128>}, {pipeline_mode = #tpu.pipeline_mode<synchronous>, transform_indices = @transform_8, window_bounds = array<i64: 8, 1>}, {transform_indices = @transform_9, window_bounds = array<i64: 1, 4, 8, 8>}, {transform_indices = @transform_10, window_bounds = array<i64: 1, 4, 8, 8>}, {transform_indices = @transform_11, window_bounds = array<i64: 1, 1, 8>}, {transform_indices = @transform_12, window_bounds = array<i64: 1, 8, 8>}, {transform_indices = @transform_13, window_bounds = array<i64: 1, 8, 8>}, {pipeline_mode = #tpu.pipeline_mode<synchronous>, transform_indices = @transform_14, window_bounds = array<i64: 4, 8, 32>}, {pipeline_mode = #tpu.pipeline_mode<synchronous>, transform_indices = @transform_15, window_bounds = array<i64: 1, 32>}, {pipeline_mode = #tpu.pipeline_mode<synchronous>, transform_indices = @transform_16, window_bounds = array<i64: 1, 32>}, {pipeline_mode = #tpu.pipeline_mode<synchronous>, transform_indices = @transform_17, window_bounds = array<i64: 1, 32>}, {pipeline_mode = #tpu.pipeline_mode<synchronous>, transform_indices = @transform_18, window_bounds = array<i64: 32, 64>}, {pipeline_mode = #tpu.pipeline_mode<synchronous>, transform_indices = @transform_19, window_bounds = array<i64: 1, 64>}, {pipeline_mode = #tpu.pipeline_mode<synchronous>, transform_indices = @transform_20, window_bounds = array<i64: 64, 32>}, {pipeline_mode = #tpu.pipeline_mode<synchronous>, transform_indices = @transform_21, window_bounds = array<i64: 1, 32>}, {transform_indices = @transform_22, window_bounds = array<i64: 1, 8, 32>}, {transform_indices = @transform_23, window_bounds = array<i64: 1, 1, 1>}]} {
    %c0 = arith.constant 0 : index
    %c0_0 = arith.constant 0 : index
    %c0_1 = arith.constant 0 : index
    %0 = vector.load %arg1[%c0, %c0_0, %c0_1] : memref<1x8x32xf32, #tpu.memory_space<vmem>>, vector<1x8x32xf32>
    %1 = vector.shape_cast %0 : vector<1x8x32xf32> to vector<8x32xf32>
    %cst = arith.constant dense<0.000000e+00> : vector<8xf32>
    %2 = vector.multi_reduction <add>, %1, %cst [1] : vector<8x32xf32> to vector<8xf32>
    %3 = vector.shape_cast %2 : vector<8xf32> to vector<8x1xf32>
    %cst_2 = arith.constant 3.200000e+01 : f32
    %4 = vector.broadcast %cst_2 : f32 to vector<8x1xf32>
    %5 = arith.divf %3, %4 : vector<8x1xf32>
    %6 = vector.broadcast %5 : vector<8x1xf32> to vector<8x32xf32>
    %7 = arith.subf %1, %6 : vector<8x32xf32>
    %8 = arith.mulf %7, %7 : vector<8x32xf32>
    %cst_3 = arith.constant dense<0.000000e+00> : vector<8xf32>
    %9 = vector.multi_reduction <add>, %8, %cst_3 [1] : vector<8x32xf32> to vector<8xf32>
    %10 = vector.shape_cast %9 : vector<8xf32> to vector<8x1xf32>
    %cst_4 = arith.constant 3.200000e+01 : f32
    %11 = vector.broadcast %cst_4 : f32 to vector<8x1xf32>
    %12 = arith.divf %10, %11 : vector<8x1xf32>
    %13 = vector.broadcast %5 : vector<8x1xf32> to vector<8x32xf32>
    %14 = arith.subf %1, %13 : vector<8x32xf32>
    %cst_5 = arith.constant 9.99999997E-7 : f32
    %15 = vector.broadcast %cst_5 : f32 to vector<8x1xf32>
    %16 = arith.addf %12, %15 : vector<8x1xf32>
    %17 = math.rsqrt %16 : vector<8x1xf32>
    %18 = vector.broadcast %17 : vector<8x1xf32> to vector<8x32xf32>
    %19 = arith.mulf %14, %18 : vector<8x32xf32>
    %c0_6 = arith.constant 0 : index
    %c0_7 = arith.constant 0 : index
    %20 = vector.load %arg2[%c0_6, %c0_7] : memref<1x32xf32, #tpu.memory_space<vmem>>, vector<1x32xf32>
    %21 = vector.broadcast %20 : vector<1x32xf32> to vector<8x32xf32>
    %22 = arith.mulf %19, %21 : vector<8x32xf32>
    %c0_8 = arith.constant 0 : index
    %c0_9 = arith.constant 0 : index
    %23 = vector.load %arg3[%c0_8, %c0_9] : memref<1x32xf32, #tpu.memory_space<vmem>>, vector<1x32xf32>
    %24 = vector.broadcast %23 : vector<1x32xf32> to vector<8x32xf32>
    %25 = arith.addf %22, %24 : vector<8x32xf32>
    %26 = arith.truncf %25 : vector<8x32xf32> to vector<8x32xbf16>
    %27 = vector.shape_cast %26 : vector<8x32xbf16> to vector<1x8x32xbf16>
    %28 = vector.shape_cast %27 : vector<1x8x32xbf16> to vector<1x8x32xbf16>
    %29 = vector.broadcast %28 : vector<1x8x32xbf16> to vector<12x8x32xbf16>
    %c0_10 = arith.constant 0 : index
    %c0_11 = arith.constant 0 : index
    %c0_12 = arith.constant 0 : index
    %30 = vector.load %arg4[%c0_10, %c0_11, %c0_12] : memref<12x32x8xbf16, #tpu.memory_space<vmem>>, vector<12x32x8xbf16>
    %cst_13 = arith.constant dense<0.000000e+00> : vector<12x8x8xf32>
    %31 = tpu.matmul %29, %30, %cst_13 {dimension_numbers = #tpu.dot_dimension_numbers<[2], [1], [1], [2], [0, 0, 0, 1, 1, 2], [0], [0]>} : vector<12x8x32xbf16>, vector<12x32x8xbf16>, vector<12x8x8xf32> -> vector<12x8x8xf32>
    %c0_14 = arith.constant 0 : index
    %c0_15 = arith.constant 0 : index
    %c0_16 = arith.constant 0 : index
    %32 = vector.load %arg5[%c0_14, %c0_15, %c0_16] : memref<12x1x8xf32, #tpu.memory_space<vmem>>, vector<12x1x8xf32>
    %33 = vector.broadcast %32 : vector<12x1x8xf32> to vector<12x8x8xf32>
    %34 = arith.addf %31, %33 : vector<12x8x8xf32>
    %35 = arith.truncf %34 : vector<12x8x8xf32> to vector<12x8x8xbf16>
    %36 = vector.extract_strided_slice %35 {offsets = [0, 0, 0], sizes = [4, 8, 8], strides = [1, 1, 1]} : vector<12x8x8xbf16> to vector<4x8x8xbf16>
    %37 = vector.extract_strided_slice %35 {offsets = [4, 0, 0], sizes = [4, 8, 8], strides = [1, 1, 1]} : vector<12x8x8xbf16> to vector<4x8x8xbf16>
    %38 = vector.extract_strided_slice %35 {offsets = [8, 0, 0], sizes = [4, 8, 8], strides = [1, 1, 1]} : vector<12x8x8xbf16> to vector<4x8x8xbf16>
    %c0_17 = arith.constant 0 : index
    %c0_18 = arith.constant 0 : index
    %c0_19 = arith.constant 0 : index
    %39 = vector.load %arg14[%c0_17, %c0_18, %c0_19] : memref<1x8x8xbf16, #tpu.memory_space<vmem>>, vector<1x8x8xbf16>
    %40 = vector.shape_cast %39 : vector<1x8x8xbf16> to vector<8x8xbf16>
    %41 = vector.shape_cast %40 : vector<8x8xbf16> to vector<1x8x8xbf16>
    %42 = vector.shape_cast %41 : vector<1x8x8xbf16> to vector<1x8x8xbf16>
    %43 = vector.broadcast %42 : vector<1x8x8xbf16> to vector<8x8x8xbf16>
    %44 = vector.extract_strided_slice %35 {offsets = [4, 0, 0], sizes = [8, 8, 8], strides = [1, 1, 1]} : vector<12x8x8xbf16> to vector<8x8x8xbf16>
    %cst_20 = arith.constant dense<0.000000e+00> : vector<8x8x8xf32>
    %45 = tpu.matmul %43, %44, %cst_20 {dimension_numbers = #tpu.dot_dimension_numbers<[2], [1], [1], [2], [0, 0, 0, 1, 1, 2], [0], [0]>} : vector<8x8x8xbf16>, vector<8x8x8xbf16>, vector<8x8x8xf32> -> vector<8x8x8xf32>
    %46 = arith.truncf %45 : vector<8x8x8xf32> to vector<8x8x8xbf16>
    %47 = vector.extract_strided_slice %46 {offsets = [0, 0, 0], sizes = [4, 8, 8], strides = [1, 1, 1]} : vector<8x8x8xbf16> to vector<4x8x8xbf16>
    %48 = vector.extract_strided_slice %46 {offsets = [4, 0, 0], sizes = [4, 8, 8], strides = [1, 1, 1]} : vector<8x8x8xbf16> to vector<4x8x8xbf16>
    %c0_21 = arith.constant 0 : index
    %c0_22 = arith.constant 0 : index
    %c0_23 = arith.constant 0 : index
    %c0_24 = arith.constant 0 : index
    %49 = vector.load %arg10[%c0_21, %c0_22, %c0_23, %c0_24] : memref<1x4x8x8xbf16, #tpu.memory_space<vmem>>, vector<1x4x8x8xbf16>
    %50 = vector.shape_cast %49 : vector<1x4x8x8xbf16> to vector<4x8x8xbf16>
    %c0_25 = arith.constant 0 : index
    %c0_26 = arith.constant 0 : index
    %c0_27 = arith.constant 0 : index
    %51 = vector.load %arg12[%c0_25, %c0_26, %c0_27] : memref<1x1x8xf32, #tpu.memory_space<vmem>>, vector<1x1x8xf32>
    %52 = vector.shape_cast %51 : vector<1x1x8xf32> to vector<1x8xf32>
    %53 = vector.shape_cast %52 : vector<1x8xf32> to vector<1x1x8xf32>
    %cst_28 = arith.constant dense<0.000000e+00> : vector<4x8x8xf32>
    %54 = tpu.matmul %36, %37, %cst_28 {dimension_numbers = #tpu.dot_dimension_numbers<[2], [2], [1], [1], [0, 0, 0, 1, 1, 1], [0], [0]>} : vector<4x8x8xbf16>, vector<4x8x8xbf16>, vector<4x8x8xf32> -> vector<4x8x8xf32>
    %cst_29 = arith.constant 0.353553385 : f32
    %55 = vector.broadcast %cst_29 : f32 to vector<4x8x8xf32>
    %56 = arith.mulf %54, %55 : vector<4x8x8xf32>
    %57 = arith.extf %50 : vector<4x8x8xbf16> to vector<4x8x8xf32>
    %58 = arith.addf %56, %57 : vector<4x8x8xf32>
    %cst_30 = arith.constant 5.000000e-01 : f32
    %59 = vector.broadcast %cst_30 : f32 to vector<1x1x8xf32>
    %60 = arith.cmpf ogt, %53, %59 : vector<1x1x8xf32>
    %cst_31 = arith.constant -1.000000e+09 : f32
    %61 = vector.shape_cast %60 : vector<1x1x8xi1> to vector<1x1x8xi1>
    %62 = vector.broadcast %61 : vector<1x1x8xi1> to vector<4x8x8xi1>
    %63 = vector.broadcast %cst_31 : f32 to vector<4x8x8xf32>
    %64 = arith.select %62, %58, %63 : vector<4x8x8xi1>, vector<4x8x8xf32>
    %cst_32 = arith.constant dense<0xFF800000> : vector<4x8xf32>
    %65 = vector.multi_reduction <maximumf>, %64, %cst_32 [2] : vector<4x8x8xf32> to vector<4x8xf32>
    %66 = vector.shape_cast %65 : vector<4x8xf32> to vector<4x8x1xf32>
    %67 = vector.broadcast %66 : vector<4x8x1xf32> to vector<4x8x8xf32>
    %68 = arith.subf %64, %67 : vector<4x8x8xf32>
    %69 = math.exp %68 : vector<4x8x8xf32>
    %cst_33 = arith.constant dense<0.000000e+00> : vector<4x8xf32>
    %70 = vector.multi_reduction <add>, %69, %cst_33 [2] : vector<4x8x8xf32> to vector<4x8xf32>
    %71 = vector.shape_cast %70 : vector<4x8xf32> to vector<4x8x1xf32>
    %72 = tpu.reciprocal %71 {approx = true} : vector<4x8x1xf32> -> vector<4x8x1xf32>
    %73 = vector.broadcast %72 : vector<4x8x1xf32> to vector<4x8x8xf32>
    %74 = arith.mulf %69, %73 : vector<4x8x8xf32>
    %75 = arith.truncf %74 : vector<4x8x8xf32> to vector<4x8x8xbf16>
    %cst_34 = arith.constant dense<0.000000e+00> : vector<4x8x8xf32>
    %76 = tpu.matmul %75, %38, %cst_34 {dimension_numbers = #tpu.dot_dimension_numbers<[2], [1], [1], [2], [0, 0, 0, 1, 1, 2], [0], [0]>} : vector<4x8x8xbf16>, vector<4x8x8xbf16>, vector<4x8x8xf32> -> vector<4x8x8xf32>
    %c0_35 = arith.constant 0 : index
    %c0_36 = arith.constant 0 : index
    %c0_37 = arith.constant 0 : index
    %c0_38 = arith.constant 0 : index
    %77 = vector.load %arg11[%c0_35, %c0_36, %c0_37, %c0_38] : memref<1x4x8x8xbf16, #tpu.memory_space<vmem>>, vector<1x4x8x8xbf16>
    %78 = vector.shape_cast %77 : vector<1x4x8x8xbf16> to vector<4x8x8xbf16>
    %c0_39 = arith.constant 0 : index
    %c0_40 = arith.constant 0 : index
    %c0_41 = arith.constant 0 : index
    %79 = vector.load %arg13[%c0_39, %c0_40, %c0_41] : memref<1x8x8xf32, #tpu.memory_space<vmem>>, vector<1x8x8xf32>
    %80 = vector.shape_cast %79 : vector<1x8x8xf32> to vector<8x8xf32>
    %81 = vector.shape_cast %80 : vector<8x8xf32> to vector<1x8x8xf32>
    %cst_42 = arith.constant dense<0.000000e+00> : vector<4x8x8xf32>
    %82 = tpu.matmul %36, %47, %cst_42 {dimension_numbers = #tpu.dot_dimension_numbers<[2], [2], [1], [1], [0, 0, 0, 1, 1, 1], [0], [0]>} : vector<4x8x8xbf16>, vector<4x8x8xbf16>, vector<4x8x8xf32> -> vector<4x8x8xf32>
    %cst_43 = arith.constant 0.353553385 : f32
    %83 = vector.broadcast %cst_43 : f32 to vector<4x8x8xf32>
    %84 = arith.mulf %82, %83 : vector<4x8x8xf32>
    %85 = arith.extf %78 : vector<4x8x8xbf16> to vector<4x8x8xf32>
    %86 = arith.addf %84, %85 : vector<4x8x8xf32>
    %cst_44 = arith.constant 5.000000e-01 : f32
    %87 = vector.broadcast %cst_44 : f32 to vector<1x8x8xf32>
    %88 = arith.cmpf ogt, %81, %87 : vector<1x8x8xf32>
    %cst_45 = arith.constant -1.000000e+09 : f32
    %89 = vector.shape_cast %88 : vector<1x8x8xi1> to vector<1x8x8xi1>
    %90 = vector.broadcast %89 : vector<1x8x8xi1> to vector<4x8x8xi1>
    %91 = vector.broadcast %cst_45 : f32 to vector<4x8x8xf32>
    %92 = arith.select %90, %86, %91 : vector<4x8x8xi1>, vector<4x8x8xf32>
    %cst_46 = arith.constant dense<0xFF800000> : vector<4x8xf32>
    %93 = vector.multi_reduction <maximumf>, %92, %cst_46 [2] : vector<4x8x8xf32> to vector<4x8xf32>
    %94 = vector.shape_cast %93 : vector<4x8xf32> to vector<4x8x1xf32>
    %95 = vector.broadcast %94 : vector<4x8x1xf32> to vector<4x8x8xf32>
    %96 = arith.subf %92, %95 : vector<4x8x8xf32>
    %97 = math.exp %96 : vector<4x8x8xf32>
    %cst_47 = arith.constant dense<0.000000e+00> : vector<4x8xf32>
    %98 = vector.multi_reduction <add>, %97, %cst_47 [2] : vector<4x8x8xf32> to vector<4x8xf32>
    %99 = vector.shape_cast %98 : vector<4x8xf32> to vector<4x8x1xf32>
    %100 = tpu.reciprocal %99 {approx = true} : vector<4x8x1xf32> -> vector<4x8x1xf32>
    %101 = vector.broadcast %100 : vector<4x8x1xf32> to vector<4x8x8xf32>
    %102 = arith.mulf %97, %101 : vector<4x8x8xf32>
    %103 = arith.truncf %102 : vector<4x8x8xf32> to vector<4x8x8xbf16>
    %cst_48 = arith.constant dense<0.000000e+00> : vector<4x8x8xf32>
    %104 = tpu.matmul %103, %48, %cst_48 {dimension_numbers = #tpu.dot_dimension_numbers<[2], [1], [1], [2], [0, 0, 0, 1, 1, 2], [0], [0]>} : vector<4x8x8xbf16>, vector<4x8x8xbf16>, vector<4x8x8xf32> -> vector<4x8x8xf32>
    %c0_49 = arith.constant 0 : index
    %c0_50 = arith.constant 0 : index
    %105 = vector.load %arg6[%c0_49, %c0_50] : memref<32x256xbf16, #tpu.memory_space<vmem>>, vector<32x256xbf16>
    %cst_51 = arith.constant dense<0.000000e+00> : vector<8x256xf32>
    %106 = tpu.matmul %26, %105, %cst_51 {dimension_numbers = #tpu.dot_dimension_numbers<[1], [0], [0], [1], [0, 0, 1, 1], [], []>} : vector<8x32xbf16>, vector<32x256xbf16>, vector<8x256xf32> -> vector<8x256xf32>
    %c0_52 = arith.constant 0 : index
    %c0_53 = arith.constant 0 : index
    %107 = vector.load %arg7[%c0_52, %c0_53] : memref<1x256xf32, #tpu.memory_space<vmem>>, vector<1x256xf32>
    %108 = vector.broadcast %107 : vector<1x256xf32> to vector<8x256xf32>
    %109 = arith.addf %106, %108 : vector<8x256xf32>
    %110 = vector.extract_strided_slice %109 {offsets = [0, 0], sizes = [8, 128], strides = [1, 1]} : vector<8x256xf32> to vector<8x128xf32>
    %111 = vector.extract_strided_slice %109 {offsets = [0, 128], sizes = [8, 128], strides = [1, 1]} : vector<8x256xf32> to vector<8x128xf32>
    %112 = arith.negf %110 : vector<8x128xf32>
    %113 = math.exp %112 : vector<8x128xf32>
    %cst_54 = arith.constant 1.000000e+00 : f32
    %114 = vector.broadcast %cst_54 : f32 to vector<8x128xf32>
    %115 = arith.addf %114, %113 : vector<8x128xf32>
    %116 = arith.divf %114, %115 : vector<8x128xf32>
    %117 = arith.mulf %110, %116 : vector<8x128xf32>
    %118 = arith.mulf %117, %111 : vector<8x128xf32>
    %c0_55 = arith.constant 0 : index
    %c0_56 = arith.constant 0 : index
    %119 = vector.load %arg8[%c0_55, %c0_56] : memref<8x128xbf16, #tpu.memory_space<vmem>>, vector<8x128xbf16>
    %120 = arith.truncf %118 : vector<8x128xf32> to vector<8x128xbf16>
    %cst_57 = arith.constant dense<0.000000e+00> : vector<8x8xf32>
    %121 = tpu.matmul %119, %120, %cst_57 {dimension_numbers = #tpu.dot_dimension_numbers<[1], [1], [0], [0], [0, 0, 1, 0], [], []>} : vector<8x128xbf16>, vector<8x128xbf16>, vector<8x8xf32> -> vector<8x8xf32>
    %c0_58 = arith.constant 0 : index
    %c0_59 = arith.constant 0 : index
    %122 = vector.load %arg9[%c0_58, %c0_59] : memref<8x1xf32, #tpu.memory_space<vmem>>, vector<8x1xf32>
    %123 = vector.broadcast %122 : vector<8x1xf32> to vector<8x8xf32>
    %124 = arith.addf %121, %123 : vector<8x8xf32>
    %125 = vector.extract_strided_slice %124 {offsets = [0, 0], sizes = [4, 8], strides = [1, 1]} : vector<8x8xf32> to vector<4x8xf32>
    %126 = vector.extract_strided_slice %124 {offsets = [4, 0], sizes = [4, 8], strides = [1, 1]} : vector<8x8xf32> to vector<4x8xf32>
    %127 = arith.maximumf %125, %126 : vector<4x8xf32>
    %128 = arith.subf %125, %127 : vector<4x8xf32>
    %129 = math.exp %128 : vector<4x8xf32>
    %130 = arith.subf %126, %127 : vector<4x8xf32>
    %131 = math.exp %130 : vector<4x8xf32>
    %132 = arith.addf %129, %131 : vector<4x8xf32>
    %133 = tpu.reciprocal %132 {approx = true} : vector<4x8xf32> -> vector<4x8xf32>
    %134 = arith.mulf %129, %133 : vector<4x8xf32>
    %135 = arith.mulf %131, %133 : vector<4x8xf32>
    %cst_60 = arith.constant 9.99999971E-10 : f32
    %136 = vector.broadcast %cst_60 : f32 to vector<4x8xf32>
    %137 = arith.addf %134, %136 : vector<4x8xf32>
    %138 = math.log %137 : vector<4x8xf32>
    %139 = arith.mulf %134, %138 : vector<4x8xf32>
    %cst_61 = arith.constant 9.99999971E-10 : f32
    %140 = vector.broadcast %cst_61 : f32 to vector<4x8xf32>
    %141 = arith.addf %135, %140 : vector<4x8xf32>
    %142 = math.log %141 : vector<4x8xf32>
    %143 = arith.mulf %135, %142 : vector<4x8xf32>
    %144 = arith.addf %139, %143 : vector<4x8xf32>
    %cst_62 = arith.constant 0.000000e+00 : f32
    %145 = vector.broadcast %cst_62 : f32 to vector<4x8xf32>
    %146 = arith.subf %145, %144 : vector<4x8xf32>
    %cst_63 = arith.constant dense<0.000000e+00> : vector<4xf32>
    %147 = vector.multi_reduction <add>, %146, %cst_63 [1] : vector<4x8xf32> to vector<4xf32>
    %148 = vector.shape_cast %147 : vector<4xf32> to vector<4x1xf32>
    %cst_64 = arith.constant dense<0.000000e+00> : vector<1xf32>
    %149 = vector.multi_reduction <add>, %148, %cst_64 [0] : vector<4x1xf32> to vector<1xf32>
    %150 = vector.shape_cast %149 : vector<1xf32> to vector<1x1xf32>
    %c0_65 = arith.constant 0 : index
    %c0_66 = arith.constant 0 : index
    %c0_67 = arith.constant 0 : index
    %151 = vector.load %arg24[%c0_65, %c0_66, %c0_67] : memref<1x1x1xf32, #tpu.memory_space<vmem>>, vector<1x1x1xf32>
    %152 = vector.shape_cast %151 : vector<1x1x1xf32> to vector<1x1xf32>
    %153 = vector.shape_cast %150 : vector<1x1xf32> to vector<1x1x1xf32>
    tpu.vector_store %arg24[%c0_65, %c0_66, %c0_67], %153 {strides = array<i32>} : memref<1x1x1xf32, #tpu.memory_space<vmem>>, vector<1x1x1xf32>,
    %154 = vector.shape_cast %134 : vector<4x8xf32> to vector<4x8x1xf32>
    %155 = vector.broadcast %154 : vector<4x8x1xf32> to vector<4x8x8xf32>
    %156 = arith.mulf %155, %76 : vector<4x8x8xf32>
    %157 = vector.shape_cast %135 : vector<4x8xf32> to vector<4x8x1xf32>
    %158 = vector.broadcast %157 : vector<4x8x1xf32> to vector<4x8x8xf32>
    %159 = arith.mulf %158, %104 : vector<4x8x8xf32>
    %160 = arith.addf %156, %159 : vector<4x8x8xf32>
    %161 = arith.truncf %160 : vector<4x8x8xf32> to vector<4x8x8xbf16>
    %c0_68 = arith.constant 0 : index
    %c0_69 = arith.constant 0 : index
    %c0_70 = arith.constant 0 : index
    %162 = vector.load %arg15[%c0_68, %c0_69, %c0_70] : memref<4x8x32xbf16, #tpu.memory_space<vmem>>, vector<4x8x32xbf16>
    %cst_71 = arith.constant dense<0.000000e+00> : vector<4x8x32xf32>
    %163 = tpu.matmul %161, %162, %cst_71 {dimension_numbers = #tpu.dot_dimension_numbers<[2], [1], [1], [2], [0, 0, 0, 1, 1, 2], [0], [0]>} : vector<4x8x8xbf16>, vector<4x8x32xbf16>, vector<4x8x32xf32> -> vector<4x8x32xf32>
    %cst_72 = arith.constant dense<0.000000e+00> : vector<8x32xf32>
    %164 = vector.multi_reduction <add>, %163, %cst_72 [0] : vector<4x8x32xf32> to vector<8x32xf32>
    %c0_73 = arith.constant 0 : index
    %c0_74 = arith.constant 0 : index
    %165 = vector.load %arg16[%c0_73, %c0_74] : memref<1x32xf32, #tpu.memory_space<vmem>>, vector<1x32xf32>
    %166 = vector.broadcast %165 : vector<1x32xf32> to vector<8x32xf32>
    %167 = arith.addf %164, %166 : vector<8x32xf32>
    %168 = arith.addf %1, %167 : vector<8x32xf32>
    %cst_75 = arith.constant dense<0.000000e+00> : vector<8xf32>
    %169 = vector.multi_reduction <add>, %168, %cst_75 [1] : vector<8x32xf32> to vector<8xf32>
    %170 = vector.shape_cast %169 : vector<8xf32> to vector<8x1xf32>
    %cst_76 = arith.constant 3.200000e+01 : f32
    %171 = vector.broadcast %cst_76 : f32 to vector<8x1xf32>
    %172 = arith.divf %170, %171 : vector<8x1xf32>
    %173 = vector.broadcast %172 : vector<8x1xf32> to vector<8x32xf32>
    %174 = arith.subf %168, %173 : vector<8x32xf32>
    %175 = arith.mulf %174, %174 : vector<8x32xf32>
    %cst_77 = arith.constant dense<0.000000e+00> : vector<8xf32>
    %176 = vector.multi_reduction <add>, %175, %cst_77 [1] : vector<8x32xf32> to vector<8xf32>
    %177 = vector.shape_cast %176 : vector<8xf32> to vector<8x1xf32>
    %cst_78 = arith.constant 3.200000e+01 : f32
    %178 = vector.broadcast %cst_78 : f32 to vector<8x1xf32>
    %179 = arith.divf %177, %178 : vector<8x1xf32>
    %180 = vector.broadcast %172 : vector<8x1xf32> to vector<8x32xf32>
    %181 = arith.subf %168, %180 : vector<8x32xf32>
    %cst_79 = arith.constant 9.99999997E-7 : f32
    %182 = vector.broadcast %cst_79 : f32 to vector<8x1xf32>
    %183 = arith.addf %179, %182 : vector<8x1xf32>
    %184 = math.rsqrt %183 : vector<8x1xf32>
    %185 = vector.broadcast %184 : vector<8x1xf32> to vector<8x32xf32>
    %186 = arith.mulf %181, %185 : vector<8x32xf32>
    %c0_80 = arith.constant 0 : index
    %c0_81 = arith.constant 0 : index
    %187 = vector.load %arg17[%c0_80, %c0_81] : memref<1x32xf32, #tpu.memory_space<vmem>>, vector<1x32xf32>
    %188 = vector.broadcast %187 : vector<1x32xf32> to vector<8x32xf32>
    %189 = arith.mulf %186, %188 : vector<8x32xf32>
    %c0_82 = arith.constant 0 : index
    %c0_83 = arith.constant 0 : index
    %190 = vector.load %arg18[%c0_82, %c0_83] : memref<1x32xf32, #tpu.memory_space<vmem>>, vector<1x32xf32>
    %191 = vector.broadcast %190 : vector<1x32xf32> to vector<8x32xf32>
    %192 = arith.addf %189, %191 : vector<8x32xf32>
    %193 = arith.truncf %192 : vector<8x32xf32> to vector<8x32xbf16>
    %c0_84 = arith.constant 0 : index
    %c0_85 = arith.constant 0 : index
    %194 = vector.load %arg19[%c0_84, %c0_85] : memref<32x64xbf16, #tpu.memory_space<vmem>>, vector<32x64xbf16>
    %cst_86 = arith.constant dense<0.000000e+00> : vector<8x64xf32>
    %195 = tpu.matmul %193, %194, %cst_86 {dimension_numbers = #tpu.dot_dimension_numbers<[1], [0], [0], [1], [0, 0, 1, 1], [], []>} : vector<8x32xbf16>, vector<32x64xbf16>, vector<8x64xf32> -> vector<8x64xf32>
    %c0_87 = arith.constant 0 : index
    %c0_88 = arith.constant 0 : index
    %196 = vector.load %arg20[%c0_87, %c0_88] : memref<1x64xf32, #tpu.memory_space<vmem>>, vector<1x64xf32>
    %197 = vector.broadcast %196 : vector<1x64xf32> to vector<8x64xf32>
    %198 = arith.addf %195, %197 : vector<8x64xf32>
    %cst_89 = arith.constant 0.000000e+00 : f32
    %199 = vector.broadcast %cst_89 : f32 to vector<8x64xf32>
    %200 = arith.maximumf %198, %199 : vector<8x64xf32>
    %201 = arith.truncf %200 : vector<8x64xf32> to vector<8x64xbf16>
    %c0_90 = arith.constant 0 : index
    %c0_91 = arith.constant 0 : index
    %202 = vector.load %arg21[%c0_90, %c0_91] : memref<64x32xbf16, #tpu.memory_space<vmem>>, vector<64x32xbf16>
    %cst_92 = arith.constant dense<0.000000e+00> : vector<8x32xf32>
    %203 = tpu.matmul %201, %202, %cst_92 {dimension_numbers = #tpu.dot_dimension_numbers<[1], [0], [0], [1], [0, 0, 1, 1], [], []>} : vector<8x64xbf16>, vector<64x32xbf16>, vector<8x32xf32> -> vector<8x32xf32>
    %c0_93 = arith.constant 0 : index
    %c0_94 = arith.constant 0 : index
    %204 = vector.load %arg22[%c0_93, %c0_94] : memref<1x32xf32, #tpu.memory_space<vmem>>, vector<1x32xf32>
    %205 = vector.broadcast %204 : vector<1x32xf32> to vector<8x32xf32>
    %206 = arith.addf %203, %205 : vector<8x32xf32>
    %207 = arith.addf %168, %206 : vector<8x32xf32>
    %c0_95 = arith.constant 0 : index
    %c0_96 = arith.constant 0 : index
    %c0_97 = arith.constant 0 : index
    %208 = vector.load %arg23[%c0_95, %c0_96, %c0_97] : memref<1x8x32xf32, #tpu.memory_space<vmem>>, vector<1x8x32xf32>
    %209 = vector.shape_cast %208 : vector<1x8x32xf32> to vector<8x32xf32>
    %210 = vector.shape_cast %207 : vector<8x32xf32> to vector<1x8x32xf32>
    tpu.vector_store %arg23[%c0_95, %c0_96, %c0_97], %210 {strides = array<i32>} : memref<1x8x32xf32, #tpu.memory_space<vmem>>, vector<1x8x32xf32>,
    return
  }
  func.func @transform_0(%arg0: i32) -> (i32, i32, i32) {
    %c0_i32 = arith.constant 0 : i32
    %c0_i32_0 = arith.constant 0 : i32
    %c0_i32_1 = arith.constant 0 : i32
    return %arg0, %c0_i32, %c0_i32_0 : i32, i32, i32
  }
  func.func @transform_1(%arg0: i32) -> (i32, i32) {
    %c0_i32 = arith.constant 0 : i32
    %c0_i32_0 = arith.constant 0 : i32
    %c0_i32_1 = arith.constant 0 : i32
    return %c0_i32, %c0_i32_0 : i32, i32
  }
  func.func @transform_2(%arg0: i32) -> (i32, i32) {
    %c0_i32 = arith.constant 0 : i32
    %c0_i32_0 = arith.constant 0 : i32
    %c0_i32_1 = arith.constant 0 : i32
    return %c0_i32, %c0_i32_0 : i32, i32
  }
  func.func @transform_3(%arg0: i32) -> (i32, i32, i32) {
    %c0_i32 = arith.constant 0 : i32
    %c0_i32_0 = arith.constant 0 : i32
    %c0_i32_1 = arith.constant 0 : i32
    %c0_i32_2 = arith.constant 0 : i32
    return %c0_i32, %c0_i32_0, %c0_i32_1 : i32, i32, i32
  }
  func.func @transform_4(%arg0: i32) -> (i32, i32, i32) {
    %c0_i32 = arith.constant 0 : i32
    %c0_i32_0 = arith.constant 0 : i32
    %c0_i32_1 = arith.constant 0 : i32
    %c0_i32_2 = arith.constant 0 : i32
    return %c0_i32, %c0_i32_0, %c0_i32_1 : i32, i32, i32
  }
  func.func @transform_5(%arg0: i32) -> (i32, i32) {
    %c0_i32 = arith.constant 0 : i32
    %c0_i32_0 = arith.constant 0 : i32
    %c0_i32_1 = arith.constant 0 : i32
    return %c0_i32, %c0_i32_0 : i32, i32
  }
  func.func @transform_6(%arg0: i32) -> (i32, i32) {
    %c0_i32 = arith.constant 0 : i32
    %c0_i32_0 = arith.constant 0 : i32
    %c0_i32_1 = arith.constant 0 : i32
    return %c0_i32, %c0_i32_0 : i32, i32
  }
  func.func @transform_7(%arg0: i32) -> (i32, i32) {
    %c0_i32 = arith.constant 0 : i32
    %c0_i32_0 = arith.constant 0 : i32
    %c0_i32_1 = arith.constant 0 : i32
    return %c0_i32, %c0_i32_0 : i32, i32
  }
  func.func @transform_8(%arg0: i32) -> (i32, i32) {
    %c0_i32 = arith.constant 0 : i32
    %c0_i32_0 = arith.constant 0 : i32
    %c0_i32_1 = arith.constant 0 : i32
    return %c0_i32, %c0_i32_0 : i32, i32
  }
  func.func @transform_9(%arg0: i32) -> (i32, i32, i32, i32) {
    %c0_i32 = arith.constant 0 : i32
    %c0_i32_0 = arith.constant 0 : i32
    %c0_i32_1 = arith.constant 0 : i32
    %c0_i32_2 = arith.constant 0 : i32
    return %arg0, %c0_i32, %c0_i32_0, %c0_i32_1 : i32, i32, i32, i32
  }
  func.func @transform_10(%arg0: i32) -> (i32, i32, i32, i32) {
    %c0_i32 = arith.constant 0 : i32
    %c0_i32_0 = arith.constant 0 : i32
    %c0_i32_1 = arith.constant 0 : i32
    %c0_i32_2 = arith.constant 0 : i32
    return %arg0, %c0_i32, %c0_i32_0, %c0_i32_1 : i32, i32, i32, i32
  }
  func.func @transform_11(%arg0: i32) -> (i32, i32, i32) {
    %c0_i32 = arith.constant 0 : i32
    %c0_i32_0 = arith.constant 0 : i32
    %c0_i32_1 = arith.constant 0 : i32
    return %arg0, %c0_i32, %c0_i32_0 : i32, i32, i32
  }
  func.func @transform_12(%arg0: i32) -> (i32, i32, i32) {
    %c0_i32 = arith.constant 0 : i32
    %c0_i32_0 = arith.constant 0 : i32
    %c0_i32_1 = arith.constant 0 : i32
    return %arg0, %c0_i32, %c0_i32_0 : i32, i32, i32
  }
  func.func @transform_13(%arg0: i32) -> (i32, i32, i32) {
    %c0_i32 = arith.constant 0 : i32
    %c0_i32_0 = arith.constant 0 : i32
    %c0_i32_1 = arith.constant 0 : i32
    return %arg0, %c0_i32, %c0_i32_0 : i32, i32, i32
  }
  func.func @transform_14(%arg0: i32) -> (i32, i32, i32) {
    %c0_i32 = arith.constant 0 : i32
    %c0_i32_0 = arith.constant 0 : i32
    %c0_i32_1 = arith.constant 0 : i32
    %c0_i32_2 = arith.constant 0 : i32
    return %c0_i32, %c0_i32_0, %c0_i32_1 : i32, i32, i32
  }
  func.func @transform_15(%arg0: i32) -> (i32, i32) {
    %c0_i32 = arith.constant 0 : i32
    %c0_i32_0 = arith.constant 0 : i32
    %c0_i32_1 = arith.constant 0 : i32
    return %c0_i32, %c0_i32_0 : i32, i32
  }
  func.func @transform_16(%arg0: i32) -> (i32, i32) {
    %c0_i32 = arith.constant 0 : i32
    %c0_i32_0 = arith.constant 0 : i32
    %c0_i32_1 = arith.constant 0 : i32
    return %c0_i32, %c0_i32_0 : i32, i32
  }
  func.func @transform_17(%arg0: i32) -> (i32, i32) {
    %c0_i32 = arith.constant 0 : i32
    %c0_i32_0 = arith.constant 0 : i32
    %c0_i32_1 = arith.constant 0 : i32
    return %c0_i32, %c0_i32_0 : i32, i32
  }
  func.func @transform_18(%arg0: i32) -> (i32, i32) {
    %c0_i32 = arith.constant 0 : i32
    %c0_i32_0 = arith.constant 0 : i32
    %c0_i32_1 = arith.constant 0 : i32
    return %c0_i32, %c0_i32_0 : i32, i32
  }
  func.func @transform_19(%arg0: i32) -> (i32, i32) {
    %c0_i32 = arith.constant 0 : i32
    %c0_i32_0 = arith.constant 0 : i32
    %c0_i32_1 = arith.constant 0 : i32
    return %c0_i32, %c0_i32_0 : i32, i32
  }
  func.func @transform_20(%arg0: i32) -> (i32, i32) {
    %c0_i32 = arith.constant 0 : i32
    %c0_i32_0 = arith.constant 0 : i32
    %c0_i32_1 = arith.constant 0 : i32
    return %c0_i32, %c0_i32_0 : i32, i32
  }
  func.func @transform_21(%arg0: i32) -> (i32, i32) {
    %c0_i32 = arith.constant 0 : i32
    %c0_i32_0 = arith.constant 0 : i32
    %c0_i32_1 = arith.constant 0 : i32
    return %c0_i32, %c0_i32_0 : i32, i32
  }
  func.func @transform_22(%arg0: i32) -> (i32, i32, i32) {
    %c0_i32 = arith.constant 0 : i32
    %c0_i32_0 = arith.constant 0 : i32
    %c0_i32_1 = arith.constant 0 : i32
    return %arg0, %c0_i32, %c0_i32_0 : i32, i32, i32
  }
  func.func @transform_23(%arg0: i32) -> (i32, i32, i32) {
    %c0_i32 = arith.constant 0 : i32
    %c0_i32_0 = arith.constant 0 : i32
    %c0_i32_1 = arith.constant 0 : i32
    return %arg0, %c0_i32, %c0_i32_0 : i32, i32, i32
  }
}

</mosaic_0001>

<bundles_post_ra>
// kernel: byt5_encoder.5
= control target key start
LH: loop header
LB: loop body
LE: loop exit
PB: predicated region body
PF: predicated region fallthrough
CT: control target
= control target key end

     0   :  { %vm17_vm0 = vcmask 261120   ;;  %s184_s0 = inlined_call_operand.vmem [shape: f32[16,32], index: 0, kind: input, shape index: {}]   ;;  %s185_s1 = inlined_call_operand.vmem [shape: f32[1,32], index: 1, kind: input, shape index: {}]   ;;  %s186_s2 = inlined_call_operand.vmem [shape: f32[1,32], index: 2, kind: input, shape index: {}]   ;;  %s187_s3 = inlined_call_operand.hbm [shape: f32[16,32], index: 3, kind: output, shape index: {}]  }
   0x1   :  { %v15_v0 = vld [vmem:[%s184_s0] sm:$0xff] }
   0x2   :  { %v18_v1 = vsel %vm17_vm0, %v15_v0, 0.0 }
   0x3   :  { %8 = vsyncpa [#allocation3], 0  ;;  %19 = vadd.xlane.f32.xlu0 %v18_v1  ;;  %v16_v2 = vld [vmem:[%s184_s0 + $0x8] sm:$0xff]  ;;  %v139_v4 = vmov 32.0   ;;  %v105_v35 = vld [vmem:[%s185_s1] ss:$0 sm:$0xff] }
   0x4   :  { %v21_v3 = vsel %vm17_vm0, %v16_v2, 0.0  ;;  %107 = vrcp.f32 %v139_v4  ;;  %v106_v39 = vld [vmem:[%s186_s2] ss:$0 sm:$0xff]  ;;  %s140_s1 = smov [#allocation2]   ;;  %s89_s22 = sshll.u32 %s187_s3, 4  ;;  %s90_s22 = int_to_ptr.hbm [resolvable:$true] %s89_s22 }
   0x5   :  { %s87_s19 = sshll.u32 %s140_s1, 4  ;;  %s141_s2 = smov 128   ;;  %s88_s19 = int_to_ptr.vmem [resolvable:$true] %s87_s19 }
   0x6   :  { %s142_s23 = smov 8  }
   0xa   :  { %v108_v5 = vpop.eup %107 }
   0xb   :  { %22 = vadd.xlane.f32.xlu0 %v21_v3  ;;  %v25_v6 = vmul.f32 32.0, %v108_v5  ;;  %vm29_vm1 = vweird.f32 %v108_v5 }
   0xd   :  { %v26_v7 = vsub.f32 1.0, %v25_v6 }
   0xf   :  { %v27_v8 = vmul.f32 %v108_v5, %v26_v7 }
  0x11   :  { %v28_v9 = vadd.f32 %v108_v5, %v27_v8 }
  0x13   :  { %v30_v10 = vsel %vm29_vm1, %v108_v5, %v28_v9 }
  0x76   :  { %v20_v11 = vpop.xlane.xlu0 %19 }
  0x77   :  { %v31_v12 = vmul.f32 %v30_v10, %v20_v11 }
  0x79   :  { %v33_v13 = vsub.f32 %v15_v0, %v31_v12 }
  0x7b   :  { %v35_v14 = vmul.f32 %v33_v13, %v33_v13 }
  0x7d   :  { %v37_v15 = vsel %vm17_vm0, %v35_v14, 0.0 }
  0x7e   :  { %38 = vadd.xlane.f32.xlu1 %v37_v15  ;;  %v23_v16 = vpop.xlane.xlu0 %22 }
  0x7f   :  { %v32_v17 = vmul.f32 %v30_v10, %v23_v16 }
  0x81   :  { %v34_v18 = vsub.f32 %v16_v2, %v32_v17 }
  0x83   :  { %v36_v19 = vmul.f32 %v34_v18, %v34_v18 }
  0x85   :  { %v40_v20 = vsel %vm17_vm0, %v36_v19, 0.0 }
  0x86   :  { %41 = vadd.xlane.f32.xlu1 %v40_v20 }
  0xf1   :  { %v39_v21 = vpop.xlane.xlu1 %38 }
  0xf2   :  { %v43_v22 = vmul.f32 %v39_v21, %v30_v10 }
  0xf4   :  { %v45_v23 = vadd.f32 1e-06, %v43_v22 }
  0xf6   :  { %109 = vrsqrt.f32 %v45_v23  ;;  %vm53_vm3 = vweird.f32 %v45_v23 }
  0xf9   :  { %v42_v24 = vpop.xlane.xlu1 %41 }
  0xfa   :  { %v44_v25 = vmul.f32 %v42_v24, %v30_v10 }
  0xfc   :  { %v110_v26 = vpop.eup %109  ;;  %v46_v27 = vadd.f32 1e-06, %v44_v25 }
  0xfd   :  { %v48_v28 = vmul.f32 %v110_v26, %v45_v23  ;;  %vm54_vm2 = vweird.f32 %v110_v26 }
  0xfe   :  { %111 = vrsqrt.f32 %v46_v27  ;;  %vm55_vm4 = vmor %vm53_vm3, %vm54_vm2  ;;  %vm63_vm6 = vweird.f32 %v46_v27 }
  0xff   :  { %v49_v29 = vmul.f32 %v110_v26, %v48_v28 }
 0x101   :  { %v50_v30 = vmul.f32 0.5, %v49_v29 }
 0x103   :  { %v51_v31 = vsub.f32 1.5, %v50_v30 }
 0x104   :  { %v112_v32 = vpop.eup %111 }
 0x105   :  { %v52_v33 = vmul.f32 %v110_v26, %v51_v31  ;;  %v58_v34 = vmul.f32 %v112_v32, %v46_v27  ;;  %vm64_vm5 = vweird.f32 %v112_v32 }
 0x106   :  { %vm65_vm7 = vmor %vm63_vm6, %vm64_vm5 }
 0x107   :  { %v56_v36 = vsel %vm55_vm4, %v110_v26, %v52_v33  ;;  %v59_v37 = vmul.f32 %v112_v32, %v58_v34 }
 0x108   :  { %v67_v38 = vmul.f32 %v56_v36, %v33_v13 }
 0x109   :  { %v60_v40 = vmul.f32 0.5, %v59_v37 }
 0x10a   :  { %v73_v41 = vmul.f32 %v105_v35, %v67_v38 }
 0x10b   :  { %v61_v42 = vsub.f32 1.5, %v60_v40 }
 0x10c   :  { %v79_v43 = vadd.f32 %v106_v39, %v73_v41 }
 0x10d   :  { %v62_v44 = vmul.f32 %v112_v32, %v61_v42 }
 0x10e   :  { %81 = vst.msk [vmem:[#allocation2] sm:$0xff] %vm17_vm0, %v79_v43 }
 0x10f   :  { %v66_v45 = vsel %vm65_vm7, %v112_v32, %v62_v44 }
 0x110   :  { %v68_v46 = vmul.f32 %v66_v45, %v34_v18 }
 0x112   :  { %v74_v47 = vmul.f32 %v105_v35, %v68_v46 }
 0x114   :  { %v80_v48 = vadd.f32 %v106_v39, %v74_v47 }
 0x116   :  { %82 = vst.msk [vmem:[#allocation2 + $0x8] sm:$0xff] %vm17_vm0, %v80_v48 }
 0x117   :  { %95 = dma.vmem_to_hbm [thread:$0]  %s88_s19, 256, %s90_s22, [#allocation3], %s141_s2, %s141_s2, %s142_s23  }
 0x118   :  { %137 = dma.done.wait [#allocation3], 256  }
 0x119   :  { %138 = vsyncadd [#allocation3], 4294967040 }
 0x11a   :  { %100 = vsyncpa [#allocation3], 1 }

// kernel: byt5_encoder.3
= control target key start
LH: loop header
LB: loop body
LE: loop exit
PB: predicated region body
PF: predicated region fallthrough
CT: control target
= control target key end

     0   :  { %s3315_s0 = inlined_call_operand.vmem [shape: f32[2,8,32], index: 0, kind: input, shape index: {}]   ;;  %s3316_s1 = inlined_call_operand.vmem [shape: f32[1,32], index: 1, kind: input, shape index: {}]   ;;  %s3317_s2 = inlined_call_operand.vmem [shape: f32[1,32], index: 2, kind: input, shape index: {}]   ;;  %s3318_s3 = inlined_call_operand.vmem [shape: bf16[12,32,8], index: 3, kind: input, shape index: {}]   ;;  %s3319_s4 = inlined_call_operand.vmem [shape: f32[12,1,8], index: 4, kind: input, shape index: {}]   ;;  %s3320_s5 = inlined_call_operand.vmem [shape: bf16[32,256], index: 5, kind: input, shape index: {}]   ;;  %s3321_s6 = inlined_call_operand.vmem [shape: f32[1,256], index: 6, kind: input, shape index: {}]   ;;  %s3322_s7 = inlined_call_operand.vmem [shape: bf16[8,128], index: 7, kind: input, shape index: {}]   ;;  %s3323_s8 = inlined_call_operand.vmem [shape: f32[8,1], index: 8, kind: input, shape index: {}]   ;;  %s3324_s9 = inlined_call_operand.vmem [shape: bf16[2,4,8,8], index: 9, kind: input, shape index: {}]   ;;  %s3325_s10 = inlined_call_operand.vmem [shape: bf16[2,4,8,8], index: 10, kind: input, shape index: {}]   ;;  %s3326_s11 = inlined_call_operand.vmem [shape: f32[2,1,8], index: 11, kind: input, shape index: {}]   ;;  %s3327_s12 = inlined_call_operand.vmem [shape: f32[2,8,8], index: 12, kind: input, shape index: {}]   ;;  %s3328_s13 = inlined_call_operand.vmem [shape: bf16[2,8,8], index: 13, kind: input, shape index: {}]   ;;  %s3329_s14 = inlined_call_operand.vmem [shape: bf16[4,8,32], index: 14, kind: input, shape index: {}]   ;;  %s3330_s15 = inlined_call_operand.vmem [shape: f32[1,32], index: 15, kind: input, shape index: {}]   ;;  %s3331_s16 = inlined_call_operand.vmem [shape: f32[1,32], index: 16, kind: input, shape index: {}]   ;;  %s3332_s17 = inlined_call_operand.vmem [shape: f32[1,32], index: 17, kind: input, shape index: {}]   ;;  %s3333_s18 = inlined_call_operand.vmem [shape: bf16[32,64], index: 18, kind: input, shape index: {}]   ;;  %s3334_s19 = inlined_call_operand.vmem [shape: f32[1,64], index: 19, kind: input, shape index: {}]   ;;  %s3335_s20 = inlined_call_operand.vmem [shape: bf16[64,32], index: 20, kind: input, shape index: {}]   ;;  %s3336_s21 = inlined_call_operand.vmem [shape: f32[1,32], index: 21, kind: input, shape index: {}]   ;;  %s3337_s22 = inlined_call_operand.vmem [shape: f32[2,8,32], index: 22, kind: output, shape index: {0}]   ;;  %s3338_s23 = inlined_call_operand.vmem [shape: f32[2,1,1], index: 23, kind: output, shape index: {1}]  }
   0x1   :  { %3343 = sst [smem:[#allocation2_spill]] %s3315_s0 }
   0x2   :  { %3344 = sst [smem:[#allocation3_spill]] %s3316_s1 }
   0x3   :  { %3345 = sst [smem:[#allocation4_spill]] %s3317_s2 }
   0x4   :  { %3346 = sst [smem:[#allocation5_spill]] %s3318_s3 }
   0x5   :  { %3347 = sst [smem:[#allocation6_spill]] %s3319_s4  ;;  %s2859_s4 = smov 0  }
   0x6   :  { %3348 = sst [smem:[#allocation7_spill]] %s3320_s5 }
   0x7   :  { %3349 = sst [smem:[#allocation8_spill]] %s3321_s6 }
   0x8   :  { %3350 = sst [smem:[#allocation9_spill]] %s3322_s7 }
   0x9   :  { %3351 = sst [smem:[#allocation10_spill]] %s3324_s9 }
   0xa LB: > { %s2393_s30 = sadd.s32 4294967295, %s2735_s4   ;;  %p2397_p0 = scmp.ge.s32.totalorder %s2735_s4, 1  ;;  %s2735_s4 = sphi %s2859_s4, %s34_s4  }
   0xb   : > { %p685_p1 = scmp.lt.s32.totalorder %s2735_s4, 3 }
   0xd   : > { %p686_p2 = pnand %p2397_p0, %p685_p1 }
   0xe   : > { %p771_p3 = scmp.lt.s32.totalorder (!%p686_p2), %s2393_s30, 1  ;;  %s3352_s1 = sld [smem:[#allocation2_spill]] (!%p686_p2) }
   0xf   : > { %689 = sbr.rel (%p686_p2) target bundleno = 2435 (0x983), region = 108  ;;  %s3353_s27 = sld [smem:[#allocation5_spill]] (!%p686_p2) }
  0x10   : > { %s3354_s29 = sld [smem:[#allocation3_spill]] (!%p686_p2) }
  0x11   : > { %s3355_s25 = sld [smem:[#allocation4_spill]] (!%p686_p2) }
  0x12   : > { %s3356_s0 = sld [smem:[#allocation6_spill]] (!%p686_p2) }
  0x13   : > { %s3357_s9 = sld [smem:[#allocation10_spill]] (!%p686_p2) }
  0x14   : > { %s3364_s30 = smov (!%p771_p3, %s2393_s30), 1  ;;  %vm805_vm0 = vcmask 261120   ;;  %v2737_v2 = vmov 32.0   ;;  %vm1262_vm5 = vcmask 1043456   ;;  %vm1258_vm6 = vcmask 64512  }
  0x15   : > { %s2870_s24 = sshll.u32 %s3364_s30, 3  ;;  %2676 = vrcp.f32 %v2737_v2  ;;  %v2592_v14 = vld [vmem:[%s3353_s27 + $0x8] sm:$0xff]  ;;  %v2594_v15 = vld [vmem:[%s3353_s27 + $0x18] sm:$0xff]  ;;  %v2591_v18 = vld [vmem:[%s3353_s27] sm:$0xff]  ;;  %s787_s5 = scalar_lea.vmem %s3326_s11, %s3364_s30  ;;  %vm1954_vm14 = vcmask 60416   ;;  %vm1965_vm15 = vcmask 0  }
  0x16   : > { %s2876_s26 = scalar_lea.vmem %s3352_s1, %s2870_s24  ;;  %v2596_v16 = vld [vmem:[%s3353_s27 + $0x28] sm:$0xff]  ;;  %v2598_v17 = vld [vmem:[%s3353_s27 + $0x38] sm:$0xff]  ;;  %963 = vmatpush.bf16.msra.mxu0 %v2592_v14  ;;  %988 = vmatpush.bf16.msra.mxu1 %v2594_v15  ;;  %v2593_v19 = vld [vmem:[%s3353_s27 + $0x10] sm:$0xff]  ;;  %s2404_s1 = sshll.u32 %s3364_s30, 2 }
  0x17   : > { %v804_v0 = vld [vmem:[%s2876_s26] sm:$0xff]  ;;  %1013 = vmatpush.bf16.msra.mxu2 %v2596_v16  ;;  %1038 = vmatpush.bf16.msra.mxu3 %v2598_v17  ;;  %v2597_v21 = vld [vmem:[%s3353_s27 + $0x30] sm:$0xff]  ;;  %v2600_v23 = vld [vmem:[%s3353_s27 + $0x48] sm:$0xff]  ;;  %s795_s7 = scalar_lea.vmem %s3328_s13, %s2404_s1  ;;  %s2589_s1 = sshll.u32 %s3364_s30, 4 }
  0x18   : > { %v806_v1 = vsel %vm805_vm0, %v804_v0, 0.0  ;;  %v2595_v20 = vld [vmem:[%s3353_s27 + $0x20] sm:$0xff]  ;;  %v2602_v24 = vld [vmem:[%s3353_s27 + $0x58] sm:$0xff]  ;;  %v2604_v25 = vld [vmem:[%s3353_s27 + $0x68] sm:$0xff]  ;;  %s784_s3 = scalar_lea.vmem %s3325_s10, %s2589_s1  ;;  %s791_s2 = scalar_lea.vmem %s3327_s12, %s2870_s24 }
  0x19   : > { %807 = vadd.xlane.f32.xlu0 %v806_v1  ;;  %v2606_v27 = vld [vmem:[%s3353_s27 + $0x78] sm:$0xff]  ;;  %v2599_v28 = vld [vmem:[%s3353_s27 + $0x40] sm:$0xff]  ;;  %v2601_v29 = vld [vmem:[%s3353_s27 + $0x50] sm:$0xff] }
  0x1a   : > { %964 = vmatpush.bf16.msra.mxu0 %v2591_v18  ;;  %989 = vmatpush.bf16.msra.mxu1 %v2593_v19  ;;  %v2603_v31 = vld [vmem:[%s3353_s27 + $0x60] sm:$0xff]  ;;  %v2605_v32 = vld [vmem:[%s3353_s27 + $0x70] sm:$0xff]  ;;  %v2608_v46 = vld [vmem:[%s3353_s27 + $0x88] sm:$0xff] }
  0x1b   : > { %v2677_v3 = vpop.eup %2676  ;;  %1014 = vmatpush.bf16.msra.mxu2 %v2595_v20  ;;  %1039 = vmatpush.bf16.msra.mxu3 %v2597_v21  ;;  %v2657_v39 = vld [vmem:[%s3354_s29] ss:$0 sm:$0xff]  ;;  %v2610_v47 = vld [vmem:[%s3353_s27 + $0x98] sm:$0xff]  ;;  %v2612_v48 = vld [vmem:[%s3353_s27 + $0xa8] sm:$0xff]  ;;  %s3362_s29 = sld [smem:[#allocation9_spill]] }
  0x1c   : > { %v810_v4 = vmul.f32 32.0, %v2677_v3  ;;  %vm814_vm1 = vweird.f32 %v2677_v3  ;;  %v2658_v41 = vld [vmem:[%s3355_s25] ss:$0 sm:$0xff]  ;;  %v2614_v49 = vld [vmem:[%s3353_s27 + $0xb8] sm:$0xff]  ;;  %v2609_v51 = vld [vmem:[%s3353_s27 + $0x90] sm:$0xff]  ;;  %s799_s25 = scalar_lea.vmem %s3337_s22, %s2870_s24 }
  0x1d   : > { %v2607_v50 = vld [vmem:[%s3353_s27 + $0x80] sm:$0xff]  ;;  %v2613_v53 = vld [vmem:[%s3353_s27 + $0xb0] sm:$0xff] }
  0x1e   : > { %v811_v5 = vsub.f32 1.0, %v810_v4  ;;  %1063 = vmatpush.bf16.msrb.mxu0 %v2600_v23  ;;  %1088 = vmatpush.bf16.msrb.mxu1 %v2602_v24  ;;  %v2611_v52 = vld [vmem:[%s3353_s27 + $0xa0] sm:$0xff]  ;;  %v2668_v23 = vld [vmem:[%s3356_s0 + $0x9] ss:$0 sm:$0xff] }
  0x1f   : > { %1113 = vmatpush.bf16.msrb.mxu2 %v2604_v25  ;;  %1138 = vmatpush.bf16.msrb.mxu3 %v2606_v27  ;;  %v2663_v60 = vld [vmem:[%s3356_s0 + $0x4] ss:$0 sm:$0xff]  ;;  %v2664_v61 = vld [vmem:[%s3356_s0 + $0x5] ss:$0 sm:$0xff] }
  0x20   : > { %v812_v6 = vmul.f32 %v2677_v3, %v811_v5 }
  0x22   : > { %v813_v7 = vadd.f32 %v2677_v3, %v812_v6  ;;  %1064 = vmatpush.bf16.msrb.mxu0 %v2599_v28  ;;  %1089 = vmatpush.bf16.msrb.mxu1 %v2601_v29  ;;  %v2665_v6 = vld [vmem:[%s3356_s0 + $0x6] ss:$0 sm:$0xff] }
  0x23   : > { %1114 = vmatpush.bf16.msrb.mxu2 %v2603_v31  ;;  %1139 = vmatpush.bf16.msrb.mxu3 %v2605_v32  ;;  %v2669_v32 = vld [vmem:[%s3356_s0 + $0xa] ss:$0 sm:$0xff] }
  0x24   : > { %v2880_v8 = vsel %vm814_vm1, %v2677_v3, %v813_v7  ;;  %v2666_v7 = vld [vmem:[%s3356_s0 + $0x7] ss:$0 sm:$0xff] }
  0x8c   : > { %v808_v9 = vpop.xlane.xlu0 %807 }
  0x8d   : > { %v816_v10 = vmul.f32 %v2880_v8, %v808_v9 }
  0x8f   : > { %v817_v11 = vsub.f32 %v804_v0, %v816_v10 }
  0x91   : > { %v818_v12 = vmul.f32 %v817_v11, %v817_v11 }
  0x93   : > { %v819_v13 = vsel %vm805_vm0, %v818_v12, 0.0 }
  0x94   : > { %820 = vadd.xlane.f32.xlu0 %v819_v13 }
 0x107   : > { %v821_v22 = vpop.xlane.xlu0 %820 }
 0x108   : > { %v822_v26 = vmul.f32 %v821_v22, %v2880_v8  ;;  %v2667_v22 = vld [vmem:[%s3356_s0 + $0x8] ss:$0 sm:$0xff] }
 0x10a   : > { %v823_v30 = vadd.f32 1e-06, %v822_v26 }
 0x10c   : > { %2678 = vrsqrt.f32 %v823_v30  ;;  %vm830_vm3 = vweird.f32 %v823_v30 }
 0x112   : > { %v2679_v33 = vpop.eup %2678 }
 0x113   : > { %v825_v34 = vmul.f32 %v2679_v33, %v823_v30  ;;  %vm831_vm2 = vweird.f32 %v2679_v33 }
 0x114   : > { %vm832_vm4 = vmor %vm830_vm3, %vm831_vm2 }
 0x115   : > { %v826_v35 = vmul.f32 %v2679_v33, %v825_v34 }
 0x117   : > { %v827_v36 = vmul.f32 0.5, %v826_v35 }
 0x119   : > { %v828_v37 = vsub.f32 1.5, %v827_v36 }
 0x11b   : > { %v829_v38 = vmul.f32 %v2679_v33, %v828_v37 }
 0x11d   : > { %v833_v40 = vsel %vm832_vm4, %v2679_v33, %v829_v38  ;;  %v2670_v33 = vld [vmem:[%s3356_s0 + $0xb] ss:$0 sm:$0xff]  ;;  %vm2239_vm4 = vcmask 523264  }
 0x11e   : > { %v834_v42 = vmul.f32 %v833_v40, %v817_v11  ;;  %v3015_v11 = vld [vmem:[%s795_s7] sm:$0xf]  ;;  %s779_s7 = scalar_lea.vmem %s3357_s9, %s2589_s1 }
 0x120   : > { %v839_v43 = vmul.f32 %v2657_v39, %v834_v42 }
 0x122   : > { %v844_v44 = vadd.f32 %v2658_v41, %v839_v43 }
 0x124   : > { %v2939_v45 = vpack.c.bf16 %v844_v44, %v844_v44 }
 0x126   : > { %2414 = vmatmul.msk.bf16.vlgmr.msra.gmra.mxu0 %vm805_vm0, %v2939_v45  ;;  %2423 = vmatmul.msk.bf16.vlgmr.msra.gmra.mxu1 %vm805_vm0, %v2939_v45 }
 0x127   : > { %2432 = vmatmul.msk.bf16.vlgmr.msra.gmra.mxu2 %vm805_vm0, %v2939_v45  ;;  %2441 = vmatmul.msk.bf16.vlgmr.msra.gmra.mxu3 %vm805_vm0, %v2939_v45 }
 0x128   : > { %1163 = vmatpush.bf16.msra.mxu0 %v2608_v46  ;;  %1188 = vmatpush.bf16.msra.mxu1 %v2610_v47 }
 0x129   : > { %1213 = vmatpush.bf16.msra.mxu2 %v2612_v48  ;;  %1238 = vmatpush.bf16.msra.mxu3 %v2614_v49 }
 0x12c   : > { %1164 = vmatpush.bf16.msra.mxu0 %v2607_v50  ;;  %1189 = vmatpush.bf16.msra.mxu1 %v2609_v51  ;;  %v2659_v51 = vld [vmem:[%s3356_s0] ss:$0 sm:$0xff] }
 0x12d   : > { %1214 = vmatpush.bf16.msra.mxu2 %v2611_v52  ;;  %1239 = vmatpush.bf16.msra.mxu3 %v2613_v53  ;;  %v2660_v52 = vld [vmem:[%s3356_s0 + $0x1] ss:$0 sm:$0xff] }
 0x136   : > { %2450 = vmatmul.msk.bf16.vlgmr.msrb.gmra.mxu0 %vm805_vm0, %v2939_v45  ;;  %2459 = vmatmul.msk.bf16.vlgmr.msrb.gmra.mxu1 %vm805_vm0, %v2939_v45 }
 0x137   : > { %2468 = vmatmul.msk.bf16.vlgmr.msrb.gmra.mxu2 %vm805_vm0, %v2939_v45  ;;  %2477 = vmatmul.msk.bf16.vlgmr.msrb.gmra.mxu3 %vm805_vm0, %v2939_v45 }
 0x146   : > { %2486 = vmatmul.msk.bf16.vlgmr.msra.gmra.mxu0 %vm805_vm0, %v2939_v45  ;;  %2495 = vmatmul.msk.bf16.vlgmr.msra.gmra.mxu1 %vm805_vm0, %v2939_v45 }
 0x147   : > { %2504 = vmatmul.msk.bf16.vlgmr.msra.gmra.mxu2 %vm805_vm0, %v2939_v45  ;;  %2513 = vmatmul.msk.bf16.vlgmr.msra.gmra.mxu3 %vm805_vm0, %v2939_v45 }
 0x1a3   : > { %v2989_v54 = vpop.f32.mrf.mxu0  ;;  %v2991_v55 = vpop.f32.mrf.mxu1 }
 0x1aa   : > { %v2993_v56 = vpop.f32.mrf.mxu2  ;;  %v2995_v57 = vpop.f32.mrf.mxu3 }
 0x1ab   : > { %v968_v58 = vpop.f32.mrf.mxu0  ;;  %v993_v59 = vpop.f32.mrf.mxu1 }
 0x1ac   : > { %v967_v59 = vadd.f32 %v2659_v51, %v2989_v54 }
 0x1b2   : > { %v1018_v62 = vpop.f32.mrf.mxu2  ;;  %v1043_v63 = vpop.f32.mrf.mxu3 }
 0x1b3   : > { %v1066_v0 = vpop.f32.mrf.mxu0  ;;  %v1091_v1 = vpop.f32.mrf.mxu1  ;;  %v2662_v62 = vld [vmem:[%s3356_s0 + $0x3] ss:$0 sm:$0xff]  ;;  %v3069_v63 = vpack.c.bf16 %v967_v59, %v967_v59 }
 0x1b4   : > { %v1067_v2 = vadd.f32 %v2663_v60, %v1066_v0  ;;  %v1092_v3 = vadd.f32 %v2664_v61, %v1091_v1  ;;  %v992_v60 = vadd.f32 %v2660_v52, %v2991_v55  ;;  %v2661_v61 = vld [vmem:[%s3356_s0 + $0x2] ss:$0 sm:$0xff]  ;;  %v1042_v55 = vadd.f32 %v2662_v62, %v2995_v57 }
 0x1b5   : > { %v1017_v54 = vadd.f32 %v2661_v61, %v2993_v56 }
 0x1b6   : > { %v1249_v4 = vpack.c.bf16 %v1067_v2, %v1067_v2  ;;  %v1250_v5 = vpack.c.bf16 %v1092_v3, %v1092_v3  ;;  %v3071_v0 = vpack.c.bf16 %v992_v60, %v992_v60  ;;  %v3081_v2 = vpack.c.bf16 %v1042_v55, %v1042_v55 }
 0x1b7   : > { %v3079_v1 = vpack.c.bf16 %v1017_v54, %v1017_v54 }
 0x1b8   : > { %v1264_v9 = vsel %vm1262_vm5, %v1249_v4, 0  ;;  %v1280_v10 = vsel %vm1262_vm5, %v1250_v5, 0  ;;  %v1407_v36 = vsel %vm1258_vm6, %v1249_v4, 0  ;;  %v1425_v37 = vsel %vm1258_vm6, %v1250_v5, 0 }
 0x1b9   : > { %1273 = vmatpush.bf16.msrb.mxu0 %v1264_v9  ;;  %1289 = vmatpush.bf16.msrb.mxu1 %v1280_v10  ;;  %v2738_v9 = vmov 0  }
 0x1ba   : > { %v1116_v12 = vpop.f32.mrf.mxu2  ;;  %v1141_v13 = vpop.f32.mrf.mxu3  ;;  %2653 = vset.pattern.permute.xlu0 %v2738_v9 }
 0x1bb   : > { %v1117_v14 = vadd.f32 %v2665_v6, %v1116_v12  ;;  %v1142_v15 = vadd.f32 %v2666_v7, %v1141_v13  ;;  %v1068_v16 = vpop.f32.mrf.mxu0  ;;  %v1093_v17 = vpop.f32.mrf.mxu1 }
 0x1bc   : > { %2514 = vmatmul.msk.bf16.vlgmr.msrb.gmra.mxu0 %vm1258_vm6, %v3015_v11  ;;  %2515 = vmatmul.msk.bf16.vlgmr.msrb.gmra.mxu1 %vm1258_vm6, %v3015_v11 }
 0x1bd   : > { %v1251_v18 = vpack.c.bf16 %v1117_v14, %v1117_v14  ;;  %v1252_v19 = vpack.c.bf16 %v1142_v15, %v1142_v15 }
 0x1bf   : > { %v1296_v20 = vsel %vm1262_vm5, %v1251_v18, 0  ;;  %v1312_v21 = vsel %vm1262_vm5, %v1252_v19, 0  ;;  %v1443_v49 = vsel %vm1258_vm6, %v1251_v18, 0  ;;  %v1461_v50 = vsel %vm1258_vm6, %v1252_v19, 0 }
 0x1c0   : > { %1305 = vmatpush.bf16.msrb.mxu2 %v1296_v20  ;;  %1321 = vmatpush.bf16.msrb.mxu3 %v1312_v21  ;;  %v1403_v21 = vld [vmem:[%s787_s5] sm:$0x1]  ;;  %s3361_s5 = sld [smem:[#allocation8_spill]] }
 0x1c1   : > { %vm1488_vm7 = vcmp.gt.f32.partialorder %v1403_v21, 0.5 }
 0x1c2   : > { %v1118_v24 = vpop.f32.mrf.mxu2  ;;  %v1143_v25 = vpop.f32.mrf.mxu3 }
 0x1c3   : > { %2516 = vmatmul.msk.bf16.vlgmr.msrb.gmra.mxu2 %vm1258_vm6, %v3015_v11  ;;  %2517 = vmatmul.msk.bf16.vlgmr.msrb.gmra.mxu3 %vm1258_vm6, %v3015_v11  ;;  %v1166_v26 = vpop.f32.mrf.mxu0  ;;  %v1191_v27 = vpop.f32.mrf.mxu1  ;;  %v1489_v24 = vsel %vm1488_vm7, 1, %v2738_v9  ;;  %v2626_v25 = vld [vmem:[%s779_s7] sm:$0xff]  }
 0x1c4   : > { %v1167_v28 = vadd.f32 %v2667_v22, %v1166_v26  ;;  %v1192_v29 = vadd.f32 %v2668_v23, %v1191_v27 }
 0x1c6   : > { %v1253_v30 = vpack.c.bf16 %v1167_v28, %v1167_v28  ;;  %v1254_v31 = vpack.c.bf16 %v1192_v29, %v1192_v29  ;;  %v1490_v28 = vperm.slane %v1489_v24, 0  ;;  %v2627_v29 = vunpack.c.l.bf16 %v2626_v25 }
 0x1c8   : > { %v1328_v34 = vsel %vm1262_vm5, %v1253_v30, 0  ;;  %v1344_v35 = vsel %vm1262_vm5, %v1254_v31, 0  ;;  %vm3109_vm8 = vcmp.eq.s32.totalorder %v1490_v28, 1 }
 0x1c9   : > { %1337 = vmatpush.bf16.msra.mxu0 %v1328_v34  ;;  %1353 = vmatpush.bf16.msra.mxu1 %v1344_v35 }
 0x1ca   : > { %v1216_v38 = vpop.f32.mrf.mxu2  ;;  %v1241_v39 = vpop.f32.mrf.mxu3 }
 0x1cb   : > { %v1217_v40 = vadd.f32 %v2669_v32, %v1216_v38  ;;  %v1242_v41 = vadd.f32 %v2670_v33, %v1241_v39  ;;  %v1168_v42 = vpop.f32.mrf.mxu0  ;;  %v1193_v43 = vpop.f32.mrf.mxu1 }
 0x1cc   : > { %2518 = vmatmul.msk.bf16.vlgmr.msra.gmra.mxu0 %vm1258_vm6, %v3015_v11  ;;  %2519 = vmatmul.msk.bf16.vlgmr.msra.gmra.mxu1 %vm1258_vm6, %v3015_v11 }
 0x1cd   : > { %1416 = vmatpush.bf16.xpose.msrb.mxu0 %v1407_v36  ;;  %1434 = vmatpush.bf16.xpose.msrb.mxu1 %v1425_v37  ;;  %v1255_v44 = vpack.c.bf16 %v1217_v40, %v1217_v40  ;;  %v1256_v46 = vpack.c.bf16 %v1242_v41, %v1242_v41 }
 0x1cf   : > { %v1360_v47 = vsel %vm1262_vm5, %v1255_v44, 0  ;;  %v1376_v48 = vsel %vm1262_vm5, %v1256_v46, 0  ;;  %v2641_v44 = vld [vmem:[%s779_s7 + $0x8] sm:$0xff]   ;;  %s3360_s7 = sld [smem:[#allocation7_spill]] }
 0x1d0   : > { %1369 = vmatpush.bf16.msra.mxu2 %v1360_v47  ;;  %1385 = vmatpush.bf16.msra.mxu3 %v1376_v48 }
 0x1d2   : > { %v1218_v53 = vpop.f32.mrf.mxu2  ;;  %v1243_v58 = vpop.f32.mrf.mxu3 }
 0x1d3   : > { %2520 = vmatmul.msk.bf16.vlgmr.msra.gmra.mxu2 %vm1258_vm6, %v3015_v11  ;;  %2521 = vmatmul.msk.bf16.vlgmr.msra.gmra.mxu3 %vm1258_vm6, %v3015_v11  ;;  %v2632_v53 = vunpack.c.h.bf16 %v2641_v44 }
 0x1d4   : > { %1452 = vmatpush.bf16.xpose.msrb.mxu2 %v1443_v49  ;;  %1470 = vmatpush.bf16.xpose.msrb.mxu3 %v1461_v50 }
 0x1d5   : > { %1554 = vmatpush.bf16.msra.mxu0 %v1328_v34  ;;  %1570 = vmatpush.bf16.msra.mxu1 %v1344_v35  ;;  %v2628_v35 = vunpack.c.h.bf16 %v2626_v25 }
 0x1dc   : > { %1586 = vmatpush.bf16.msra.mxu2 %v1360_v47  ;;  %1602 = vmatpush.bf16.msra.mxu3 %v1376_v48  ;;  %v2631_v47 = vunpack.c.l.bf16 %v2641_v44 }
 0x1dd   : > { %2522 = vmatmul.msk.bf16.vlgmr.msrb.gmra.mxu0 %vm1258_vm6, %v3069_v63  ;;  %2523 = vmatmul.msk.bf16.vlgmr.msrb.gmra.mxu1 %vm1258_vm6, %v3071_v0 }
 0x1e3   : > { %2524 = vmatmul.msk.bf16.vlgmr.msrb.gmra.mxu2 %vm1258_vm6, %v3079_v1  ;;  %2525 = vmatmul.msk.bf16.vlgmr.msrb.gmra.mxu3 %vm1258_vm6, %v3081_v2 }
 0x239   : > { %v1275_v3 = vpop.f32.mrf.mxu0  ;;  %v1291_v4 = vpop.f32.mrf.mxu1 }
 0x23a   : > { %v1391_v5 = vpack.c.bf16 %v1275_v3, %v1275_v3  ;;  %v1392_v6 = vpack.c.bf16 %v1291_v4, %v1291_v4 }
 0x23c   : > { %v1614_v7 = vsel %vm1258_vm6, %v1391_v5, 0  ;;  %v1630_v56 = vsel %vm1258_vm6, %v1392_v6, 0 }
 0x23d   : > { %1623 = vmatpush.bf16.xpose.msrb.mxu0 %v1614_v7  ;;  %1639 = vmatpush.bf16.xpose.msrb.mxu1 %v1630_v56 }
 0x241   : > { %v1277_v57 = vpop.f32.mrf.mxu0  ;;  %v1293_v10 = vpop.f32.mrf.mxu1 }
 0x246   : > { %v1307_v11 = vpop.f32.mrf.mxu2  ;;  %v1323_v12 = vpop.f32.mrf.mxu3 }
 0x247   : > { %v1393_v13 = vpack.c.bf16 %v1307_v11, %v1307_v11  ;;  %v1394_v14 = vpack.c.bf16 %v1323_v12, %v1323_v12 }
 0x249   : > { %v1646_v15 = vsel %vm1258_vm6, %v1393_v13, 0  ;;  %v1662_v16 = vsel %vm1258_vm6, %v1394_v14, 0  ;;  %v3091_v17 = vpop.f32.mrf.mxu0  ;;  %v3093_v18 = vpop.f32.mrf.mxu1 }
 0x24a   : > { %1655 = vmatpush.bf16.xpose.msrb.mxu2 %v1646_v15  ;;  %1671 = vmatpush.bf16.xpose.msrb.mxu3 %v1662_v16 }
 0x24e   : > { %v1309_v19 = vpop.f32.mrf.mxu2  ;;  %v1325_v20 = vpop.f32.mrf.mxu3 }
 0x251   : > { %v1341_v22 = vpop.f32.mrf.mxu0  ;;  %v1357_v23 = vpop.f32.mrf.mxu1 }
 0x256   : > { %v3105_v26 = vpop.f32.mrf.mxu2  ;;  %v3107_v27 = vpop.f32.mrf.mxu3 }
 0x25a   : > { %v1418_v30 = vpop.f32.mrf.mxu0  ;;  %v1436_v31 = vpop.f32.mrf.mxu1 }
 0x25b   : > { %v1476_v32 = vmul.f32 0.35355338, %v1418_v30  ;;  %v1477_v36 = vmul.f32 0.35355338, %v1436_v31 }
 0x25d   : > { %v1484_v34 = vadd.f32 %v2627_v29, %v1476_v32  ;;  %v1485_v41 = vadd.f32 %v2628_v35, %v1477_v36  ;;  %v1395_v29 = vpack.c.bf16 %v3091_v17, %v3091_v17  ;;  %v1396_v36 = vpack.c.bf16 %v3093_v18, %v3093_v18 }
 0x25e   : > { %v1373_v37 = vpop.f32.mrf.mxu2  ;;  %v1389_v38 = vpop.f32.mrf.mxu3  ;;  %v1398_v18 = vpack.c.bf16 %v3107_v27, %v3107_v27 }
 0x25f   : > { %v1492_v39 = vsel %vm3109_vm8, %v1484_v34, -1e+09  ;;  %v1493_v46 = vsel %vm3109_vm8, %v1485_v41, -1e+09  ;;  %v1748_v33 = vsel %vm1262_vm5, %v1395_v29, 0  ;;  %v1767_v17 = vsel %vm1262_vm5, %v1396_v36, 0 }
 0x260   : > { %v1496_v40 = vsel %vm1258_vm6, %v1492_v39, -inf  ;;  %v1499_v51 = vsel %vm1258_vm6, %v1493_v46, -inf }
 0x261   : > { %1497 = vmax.xlane.f32.xlu1 %v1496_v40  ;;  %v1397_v40 = vpack.c.bf16 %v3105_v26, %v3105_v26 }
 0x262   : > { %v1420_v42 = vpop.f32.mrf.mxu0  ;;  %v1438_v43 = vpop.f32.mrf.mxu1 }
 0x263   : > { %v1786_v44 = vsel %vm1262_vm5, %v1397_v40, 0  ;;  %v2540_v40 = vld [vmem:[%s3360_s7] sm:$0xf] }
 0x266   : > { %v1454_v48 = vpop.f32.mrf.mxu2  ;;  %v1472_v49 = vpop.f32.mrf.mxu3 }
 0x267   : > { %v1478_v50 = vmul.f32 0.35355338, %v1454_v48  ;;  %v1479_v58 = vmul.f32 0.35355338, %v1472_v49 }
 0x269   : > { %1500 = vmax.xlane.f32.xlu1 %v1499_v51  ;;  %v1486_v52 = vadd.f32 %v2631_v47, %v1478_v50  ;;  %v1487_v61 = vadd.f32 %v2632_v53, %v1479_v58  ;;  %v1805_v47 = vsel %vm1262_vm5, %v1398_v18, 0  ;;  %v2634_v50 = vld [vmem:[%s784_s3] sm:$0xff]  }
 0x26b   : > { %v1494_v59 = vsel %vm3109_vm8, %v1486_v52, -1e+09  ;;  %v1495_v55 = vsel %vm3109_vm8, %v1487_v61, -1e+09  ;;  %v2636_v61 = vunpack.c.h.bf16 %v2634_v50 }
 0x26c   : > { %v1502_v60 = vsel %vm1258_vm6, %v1494_v59, -inf  ;;  %v1505_v3 = vsel %vm1258_vm6, %v1495_v55, -inf }
 0x26d   : > { %1503 = vmax.xlane.f32.xlu0 %v1502_v60 }
 0x26e   : > { %v1456_v62 = vpop.f32.mrf.mxu2  ;;  %v1474_v54 = vpop.f32.mrf.mxu3 }
 0x275   : > { %1506 = vmax.xlane.f32.xlu0 %v1505_v3 }
 0x2d4   : > { %v1498_v4 = vpop.xlane.xlu1 %1497 }
 0x2d5   : > { %v1508_v5 = vsub.f32 %v1492_v39, %v1498_v4 }
 0x2d7   : > { %v1512_v6 = vmul.f32 1.442695, %v1508_v5 }
 0x2d9   : > { %2680 = vpow2.f32 %v1512_v6 }
 0x2dc   : > { %v1501_v7 = vpop.xlane.xlu1 %1500 }
 0x2dd   : > { %v1509_v56 = vsub.f32 %v1493_v46, %v1501_v7 }
 0x2df   : > { %v2681_v9 = vpop.eup %2680  ;;  %v1514_v57 = vmul.f32 1.442695, %v1509_v56  ;;  %v2642_v56 = vld [vmem:[%s784_s3 + $0x8] sm:$0xff]   ;;  %s802_s3 = scalar_lea.vmem %s3338_s23, %s3364_s30 }
 0x2e0   : > { %v1520_v10 = vsel %vm1258_vm6, %v2681_v9, 0.0  ;;  %v1504_v11 = vpop.xlane.xlu0 %1503 }
 0x2e1   : > { %2682 = vpow2.f32 %v1514_v57  ;;  %1521 = vadd.xlane.f32.xlu2 %v1520_v10  ;;  %v1510_v12 = vsub.f32 %v1494_v59, %v1504_v11  ;;  %v2639_v57 = vunpack.c.l.bf16 %v2642_v56 }
 0x2e3   : > { %v1516_v13 = vmul.f32 1.442695, %v1510_v12 }
 0x2e5   : > { %2684 = vpow2.f32 %v1516_v13 }
 0x2e7   : > { %v2683_v14 = vpop.eup %2682 }
 0x2e8   : > { %v1523_v15 = vsel %vm1258_vm6, %v2683_v14, 0.0  ;;  %v1507_v16 = vpop.xlane.xlu0 %1506 }
 0x2e9   : > { %1524 = vadd.xlane.f32.xlu2 %v1523_v15  ;;  %v1511_v19 = vsub.f32 %v1495_v55, %v1507_v16  ;;  %v2640_v15 = vunpack.c.h.bf16 %v2642_v56 }
 0x2eb   : > { %v2685_v20 = vpop.eup %2684  ;;  %v1518_v21 = vmul.f32 1.442695, %v1511_v19 }
 0x2ec   : > { %v1526_v22 = vsel %vm1258_vm6, %v2685_v20, 0.0 }
 0x2ed   : > { %2686 = vpow2.f32 %v1518_v21  ;;  %1527 = vadd.xlane.f32.xlu1 %v1526_v22 }
 0x2f3   : > { %v2687_v23 = vpop.eup %2686 }
 0x2f4   : > { %v1529_v24 = vsel %vm1258_vm6, %v2687_v23, 0.0 }
 0x2f5   : > { %1530 = vadd.xlane.f32.xlu0 %v1529_v24 }
 0x354   : > { %v1522_v25 = vpop.xlane.xlu2 %1521 }
 0x355   : > { %2688 = vrcp.f32 %v1522_v25 }
 0x35b   : > { %v2689_v28 = vpop.eup %2688 }
 0x35c   : > { %v1536_v30 = vmul.f32 %v2689_v28, %v2681_v9  ;;  %v1525_v31 = vpop.xlane.xlu2 %1524 }
 0x35d   : > { %2690 = vrcp.f32 %v1525_v31 }
 0x35e   : > { %v1540_v32 = vpack.c.bf16 %v1536_v30, %v1536_v30 }
 0x360   : > { %2526 = vmatmul.msk.bf16.vlgmr.msra.gmra.mxu0 %vm1258_vm6, %v1540_v32  ;;  %v1528_v34 = vpop.xlane.xlu1 %1527 }
 0x361   : > { %1757 = vmatpush.bf16.msra.mxu0 %v1748_v33  ;;  %2692 = vrcp.f32 %v1528_v34 }
 0x363   : > { %v2691_v35 = vpop.eup %2690 }
 0x364   : > { %v1537_v37 = vmul.f32 %v2691_v35, %v2683_v14 }
 0x366   : > { %v1541_v38 = vpack.c.bf16 %v1537_v37, %v1537_v37 }
 0x367   : > { %v2693_v39 = vpop.eup %2692 }
 0x368   : > { %2527 = vmatmul.msk.bf16.vlgmr.msra.gmra.mxu1 %vm1258_vm6, %v1541_v38  ;;  %v1538_v41 = vmul.f32 %v2693_v39, %v2685_v20  ;;  %v1531_v42 = vpop.xlane.xlu0 %1530  ;;  %v2548_v38 = vld [vmem:[%s3360_s7 + $0x10] sm:$0xf]  ;;  %v2618_v39 = vld [vmem:[%s3360_s7 + $0x14] sm:$0xf0] }
 0x369   : > { %1776 = vmatpush.bf16.msra.mxu1 %v1767_v17  ;;  %2694 = vrcp.f32 %v1531_v42  ;;  %v2549_v17 = vor.u32 %v2618_v39, %v2548_v38 }
 0x36a   : > { %v1542_v43 = vpack.c.bf16 %v1538_v41, %v1538_v41  ;;  %v2616_v41 = vld [vmem:[%s3360_s7 + $0x4] sm:$0xf0] }
 0x36b   : > { %v2541_v42 = vor.u32 %v2616_v41, %v2540_v40 }
 0x36c   : > { %2528 = vmatmul.msk.bf16.vlgmr.msra.gmra.mxu2 %vm1258_vm6, %v1542_v43  ;;  %v2617_v43 = vld [vmem:[%s3360_s7 + $0x14] sm:$0xf] }
 0x36d   : > { %1795 = vmatpush.bf16.msra.mxu2 %v1786_v44  ;;  %v2550_v44 = vld [vmem:[%s3360_s7 + $0x18] sm:$0xf0] }
 0x36e   : > { %v2553_v18 = vor.u32 %v2617_v43, %v2550_v44 }
 0x36f   : > { %v2695_v46 = vpop.eup %2694 }
 0x370   : > { %2530 = vmatmul.msk.bf16.vlgmr.msrb.gmra.mxu0 %vm1258_vm6, %v3069_v63  ;;  %v1539_v26 = vmul.f32 %v2695_v46, %v2687_v23  ;;  %v2615_v46 = vld [vmem:[%s3360_s7 + $0x4] sm:$0xf] }
 0x371   : > { %1856 = vmatpush.bf16.msrb.mxu0 %v2549_v17 }
 0x372   : > { %v1543_v48 = vpack.c.bf16 %v1539_v26, %v1539_v26  ;;  %v2542_v26 = vld [vmem:[%s3360_s7 + $0x8] sm:$0xf0] }
 0x374   : > { %2529 = vmatmul.msk.bf16.vlgmr.msra.gmra.mxu3 %vm1258_vm6, %v1543_v48 }
 0x375   : > { %1814 = vmatpush.bf16.msra.mxu3 %v1805_v47  ;;  %1857 = vmatpush.bf16.msrb.mxu0 %v2541_v42  ;;  %v2545_v47 = vor.u32 %v2615_v46, %v2542_v26  ;;  %v1897_v46 = vld [vmem:[%s3362_s29] sm:$0xf] }
 0x378   : > { %2531 = vmatmul.msk.bf16.vlgmr.msrb.gmra.mxu1 %vm1258_vm6, %v3071_v0  ;;  %v2635_v0 = vunpack.c.l.bf16 %v2634_v50 }
 0x379   : > { %1869 = vmatpush.bf16.msrb.mxu1 %v2553_v18 }
 0x37c   : > { %2532 = vmatmul.msk.bf16.vlgmr.msrb.gmra.mxu2 %vm1258_vm6, %v3079_v1  ;;  %v1612_v1 = vld [vmem:[%s791_s2] sm:$0xff] }
 0x37d   : > { %vm1689_vm9 = vcmp.gt.f32.partialorder %v1612_v1, 0.5  ;;  %1870 = vmatpush.bf16.msrb.mxu1 %v2545_v47 }
 0x384   : > { %2533 = vmatmul.msk.bf16.vlgmr.msrb.gmra.mxu3 %vm1258_vm6, %v3081_v2 }
 0x3dd   : > { %v3153_v27 = vpop.f32.mrf.mxu0 }
 0x3e5   : > { %v1558_v49 = vpop.f32.mrf.mxu0  ;;  %v3155_v63 = vpop.f32.mrf.mxu1 }
 0x3ed   : > { %v1574_v51 = vpop.f32.mrf.mxu1  ;;  %v1625_v52 = vpop.f32.mrf.mxu0 }
 0x3ee   : > { %v1677_v2 = vmul.f32 0.35355338, %v1625_v52 }
 0x3ef   : > { %v3166_v58 = vpop.f32.mrf.mxu2 }
 0x3f0   : > { %v1685_v53 = vadd.f32 %v2635_v0, %v1677_v2 }
 0x3f2   : > { %v1692_v59 = vsel %vm1689_vm9, %v1685_v53, -1e+09 }
 0x3f3   : > { %v1696_v60 = vsel %vm1258_vm6, %v1692_v59, -inf }
 0x3f4   : > { %1697 = vmax.xlane.f32.xlu2 %v1696_v60 }
 0x3f5   : > { %v1627_v62 = vpop.f32.mrf.mxu0  ;;  %v1641_v54 = vpop.f32.mrf.mxu1 }
 0x3f6   : > { %v1678_v55 = vmul.f32 0.35355338, %v1641_v54 }
 0x3f7   : > { %v1590_v4 = vpop.f32.mrf.mxu2  ;;  %v3170_v5 = vpop.f32.mrf.mxu3 }
 0x3f8   : > { %v1686_v3 = vadd.f32 %v2636_v61, %v1678_v55 }
 0x3fa   : > { %v1693_v6 = vsel %vm1689_vm9, %v1686_v3, -1e+09 }
 0x3fb   : > { %v1699_v7 = vsel %vm1258_vm6, %v1693_v6, -inf }
 0x3fc   : > { %1700 = vmax.xlane.f32.xlu1 %v1699_v7 }
 0x3fd   : > { %v1643_v9 = vpop.f32.mrf.mxu1 }
 0x3ff   : > { %v1606_v10 = vpop.f32.mrf.mxu3  ;;  %v1657_v11 = vpop.f32.mrf.mxu2 }
 0x400   : > { %v1679_v12 = vmul.f32 0.35355338, %v1657_v11 }
 0x402   : > { %v1687_v13 = vadd.f32 %v2639_v57, %v1679_v12 }
 0x404   : > { %v1694_v14 = vsel %vm1689_vm9, %v1687_v13, -1e+09 }
 0x405   : > { %v1702_v36 = vsel %vm1258_vm6, %v1694_v14, -inf }
 0x407   : > { %v1659_v16 = vpop.f32.mrf.mxu2  ;;  %v1673_v19 = vpop.f32.mrf.mxu3 }
 0x408   : > { %v1680_v20 = vmul.f32 0.35355338, %v1673_v19 }
 0x40a   : > { %v1688_v21 = vadd.f32 %v2640_v15, %v1680_v20 }
 0x40c   : > { %v1695_v22 = vsel %vm1689_vm9, %v1688_v21, -1e+09 }
 0x40d   : > { %v1705_v37 = vsel %vm1258_vm6, %v1695_v22, -inf }
 0x40f   : > { %v1675_v23 = vpop.f32.mrf.mxu3 }
 0x467   : > { %v1698_v24 = vpop.xlane.xlu2 %1697 }
 0x468   : > { %v1708_v25 = vsub.f32 %v1692_v59, %v1698_v24 }
 0x46a   : > { %v1712_v28 = vmul.f32 1.442695, %v1708_v25 }
 0x46c   : > { %2696 = vpow2.f32 %v1712_v28 }
 0x46f   : > { %v1701_v29 = vpop.xlane.xlu1 %1700 }
 0x470   : > { %v1709_v30 = vsub.f32 %v1693_v6, %v1701_v29 }
 0x472   : > { %v2697_v31 = vpop.eup %2696  ;;  %v1714_v32 = vmul.f32 1.442695, %v1709_v30  ;;  %v1899_v30 = vld [vmem:[%s3323_s8] sm:$0xff] }
 0x473   : > { %v1720_v33 = vsel %vm1258_vm6, %v2697_v31, 0.0 }
 0x474   : > { %2698 = vpow2.f32 %v1714_v32  ;;  %1721 = vadd.xlane.f32.xlu2 %v1720_v33 }
 0x47a   : > { %v2699_v34 = vpop.eup %2698 }
 0x47b   : > { %v1723_v35 = vsel %vm1258_vm6, %v2699_v34, 0.0 }
 0x47c   : > { %1724 = vadd.xlane.f32.xlu1 %v1723_v35  ;;  %1703 = vmax.xlane.f32.xlu2 %v1702_v36 }
 0x484   : > { %1706 = vmax.xlane.f32.xlu1 %v1705_v37 }
 0x4e7   : > { %v1722_v48 = vpop.xlane.xlu2 %1721 }
 0x4e8   : > { %2700 = vrcp.f32 %v1722_v48 }
 0x4ee   : > { %v2701_v49 = vpop.eup %2700 }
 0x4ef   : > { %v1736_v50 = vmul.f32 %v2701_v49, %v2697_v31  ;;  %v1725_v0 = vpop.xlane.xlu1 %1724  ;;  %v1704_v1 = vpop.xlane.xlu2 %1703 }
 0x4f0   : > { %2702 = vrcp.f32 %v1725_v0  ;;  %v1710_v51 = vsub.f32 %v1694_v14, %v1704_v1  ;;  %v1824_v14 = vld [vmem:[%s3361_s5] sm:$0x3] }
 0x4f1   : > { %v1740_v52 = vpack.c.bf16 %v1736_v50, %v1736_v50  ;;  %v1826_v15 = vperm.slane %v1824_v14, 0  ;;  %v1827_v39 = vperm.slane %v1824_v14, 1  ;;  %v1968_v50 = vlaneseq }
 0x4f2   : > { %v1716_v2 = vmul.f32 1.442695, %v1710_v51 }
 0x4f3   : > { %2534 = vmatmul.msk.bf16.vlgmr.msra.gmra.mxu0 %vm1258_vm6, %v1740_v52  ;;  %v1969_v0 = vshrl.u32 %v1968_v50, 7 }
 0x4f4   : > { %2704 = vpow2.f32 %v1716_v2 }
 0x4f5   : > { %2655 = vset.pattern.permute.xlu2 %v1969_v0  ;;  %2654 = vset.pattern.permute.xlu1 %v1969_v0 }
 0x4f6   : > { %v2703_v53 = vpop.eup %2702 }
 0x4f7   : > { %v1737_v59 = vmul.f32 %v2703_v53, %v2699_v34  ;;  %v1707_v60 = vpop.xlane.xlu1 %1706 }
 0x4f8   : > { %v1711_v61 = vsub.f32 %v1695_v22, %v1707_v60 }
 0x4f9   : > { %v1741_v62 = vpack.c.bf16 %v1737_v59, %v1737_v59 }
 0x4fa   : > { %v2705_v54 = vpop.eup %2704  ;;  %v1718_v55 = vmul.f32 1.442695, %v1711_v61 }
 0x4fb   : > { %2535 = vmatmul.msk.bf16.vlgmr.msra.gmra.mxu1 %vm1258_vm6, %v1741_v62  ;;  %v1726_v3 = vsel %vm1258_vm6, %v2705_v54, 0.0 }
 0x4fc   : > { %2706 = vpow2.f32 %v1718_v55  ;;  %1727 = vadd.xlane.f32.xlu0 %v1726_v3 }
 0x502   : > { %v2707_v4 = vpop.eup %2706 }
 0x503   : > { %2554 = vmatmul.msk.bf16.vlgmr.msrb.gmra.mxu0 %vm805_vm0, %v2939_v45  ;;  %v1729_v6 = vsel %vm1258_vm6, %v2707_v4, 0.0 }
 0x504   : > { %1730 = vadd.xlane.f32.xlu2 %v1729_v6 }
 0x50b   : > { %2555 = vmatmul.msk.bf16.vlgmr.msrb.gmra.mxu1 %vm805_vm0, %v2939_v45 }
 0x510   : > { %1902 = vperm.xlu0 %2653, %v1899_v30  }
 0x518   : > { %2656 = vset.pattern.permute.xlu0 %v1969_v0 }
 0x56f   : > { %v1728_v7 = vpop.xlane.xlu0 %1727 }
 0x570   : > { %2708 = vrcp.f32 %v1728_v7  ;;  %v3212_v56 = vpop.f32.mrf.mxu0 }
 0x576   : > { %v2709_v9 = vpop.eup %2708 }
 0x577   : > { %v1738_v57 = vmul.f32 %v2709_v9, %v2705_v54  ;;  %v1731_v10 = vpop.xlane.xlu2 %1730 }
 0x578   : > { %2710 = vrcp.f32 %v1731_v10  ;;  %v1761_v11 = vpop.f32.mrf.mxu0  ;;  %v3214_v12 = vpop.f32.mrf.mxu1 }
 0x579   : > { %v1742_v13 = vpack.c.bf16 %v1738_v57, %v1738_v57 }
 0x57b   : > { %2536 = vmatmul.msk.bf16.vlgmr.msra.gmra.mxu2 %vm1258_vm6, %v1742_v13 }
 0x57e   : > { %v2711_v45 = vpop.eup %2710 }
 0x57f   : > { %v1739_v16 = vmul.f32 %v2711_v45, %v2707_v4 }
 0x580   : > { %v1780_v19 = vpop.f32.mrf.mxu1  ;;  %v1859_v20 = vpop.f32.mrf.mxu0 }
 0x581   : > { %v1743_v21 = vpack.c.bf16 %v1739_v16, %v1739_v16  ;;  %v1860_v22 = vadd.f32 %v1859_v20, %v1826_v15 }
 0x582   : > { %v1903_v1 = vpop.permute.xlu0 %1902 }
 0x583   : > { %v2556_v23 = vmul.f32 -1.442695, %v1860_v22  ;;  %2537 = vmatmul.msk.bf16.vlgmr.msra.gmra.mxu3 %vm1258_vm6, %v1743_v21 }
 0x585   : > { %2712 = vpow2.f32 %v2556_v23 }
 0x588   : > { %v1861_v24 = vpop.f32.mrf.mxu0  ;;  %v1872_v25 = vpop.f32.mrf.mxu1 }
 0x589   : > { %v1873_v43 = vadd.f32 %v1872_v25, %v1827_v39 }
 0x58b   : > { %v2713_v28 = vpop.eup %2712 }
 0x58c   : > { %v1879_v29 = vadd.f32 1.0, %v2713_v28 }
 0x58e   : > { %2714 = vrcp.f32 %v1879_v29  ;;  %v1891_v35 = vand.u32 2147483648, %v1879_v29  ;;  %v1889_v37 = vand.u32 2147483647, %v1879_v29  ;;  %vm1885_vm11 = vweird.f32 %v1879_v29 }
 0x590   : > { %v1874_v31 = vpop.f32.mrf.mxu1  ;;  %v1892_v17 = vor.u32 1.1754944e-38, %v1891_v35  ;;  %vm1890_vm13 = vcmp.eq.f32.partialorder %v1889_v37, 8.507059e+37  ;;  %v2041_v37 = vld [vmem:[%s3329_s14 + $0x8] sm:$0xf] }
 0x591   : > { %v2085_v39 = vsel %vm1262_vm5, %v2041_v37, 0 }
 0x592   : > { %2094 = vmatpush.bf16.msra.mxu1 %v2085_v39  ;;  %v2619_v39 = vld [vmem:[%s3333_s18] sm:$0xff] }
 0x594   : > { %v2715_v32 = vpop.eup %2714 }
 0x595   : > { %v1881_v33 = vmul.f32 %v2715_v32, %v1879_v29  ;;  %vm1886_vm10 = vweird.f32 %v2715_v32 }
 0x596   : > { %vm1887_vm12 = vmor %vm1885_vm11, %vm1886_vm10 }
 0x597   : > { %v1882_v34 = vsub.f32 1.0, %v1881_v33 }
 0x599   : > { %v1883_v36 = vmul.f32 %v2715_v32, %v1882_v34 }
 0x59b   : > { %v1884_v38 = vadd.f32 %v2715_v32, %v1883_v36  ;;  %v2039_v36 = vld [vmem:[%s3329_s14] sm:$0xf] }
 0x59d   : > { %v1888_v40 = vsel %vm1887_vm12, %v2715_v32, %v1884_v38  ;;  %v2047_v38 = vsel %vm1262_vm5, %v2039_v36, 0 }
 0x59e   : > { %v1893_v41 = vsel %vm1890_vm13, %v1892_v17, %v1888_v40  ;;  %2056 = vmatpush.bf16.msrb.mxu3 %v2047_v38  ;;  %v2042_v40 = vld [vmem:[%s3329_s14 + $0xc] sm:$0xf] }
 0x59f   : > { %v1895_v42 = vmul.f32 %v1893_v41, %v1860_v22  ;;  %v2104_v41 = vsel %vm1262_vm5, %v2042_v40, 0  ;;  %v2620_v38 = vld [vmem:[%s3333_s18 + $0x8] sm:$0xff] }
 0x5a1   : > { %v1896_v44 = vmul.f32 %v1895_v42, %v1873_v43  ;;  %v2040_v43 = vld [vmem:[%s3329_s14 + $0x4] sm:$0xf] }
 0x5a2   : > { %2194 = vmatpush.bf16.msra.mxu3 %v2620_v38 }
 0x5a3   : > { %v1898_v18 = vpack.c.bf16 %v1896_v44, %v1896_v44  ;;  %v2066_v44 = vsel %vm1262_vm5, %v2040_v43, 0 }
 0x5a4   : > { %2075 = vmatpush.bf16.msra.mxu0 %v2066_v44 }
 0x5a5   : > { %1912 = vmatpush.bf16.xpose.msrb.mxu2 %v1898_v18 }
 0x5a6   : > { %2195 = vmatpush.bf16.msra.mxu3 %v2619_v39 }
 0x5ac   : > { %1913 = vmatmul.bf16.vlgmr.msrb.gmra.mxu2 %v1897_v46 }
 0x5ad   : > { %2113 = vmatpush.bf16.msra.mxu2 %v2104_v41 }
 0x5fe   : > { %v3227_v26 = vpop.f32.mrf.mxu2 }
 0x606   : > { %v1799_v47 = vpop.f32.mrf.mxu2  ;;  %v3229_v48 = vpop.f32.mrf.mxu3 }
 0x60e   : > { %v1818_v49 = vpop.f32.mrf.mxu3 }
 0x62f   : > { %v1914_v51 = vpop.f32.mrf.mxu2 }
 0x630   : > { %v1915_v52 = vadd.f32 %v1914_v51, %v1903_v1 }
 0x632   : > { %v1919_v2 = vrot.slane %v1915_v52, 4 }
 0x634   : > { %v1921_v53 = vmax.f32 %v1915_v52, %v1919_v2 }
 0x636   : > { %v1922_v59 = vsub.f32 %v1915_v52, %v1921_v53  ;;  %v1926_v60 = vrot.slane %v1921_v53, 4 }
 0x637   : > { %v1916_v61 = vpop.f32.mrf.mxu2 }
 0x638   : > { %v1928_v62 = vsub.f32 %v1915_v52, %v1926_v60  ;;  %v1923_v54 = vmul.f32 1.442695, %v1922_v59 }
 0x63a   : > { %v1929_v55 = vmul.f32 1.442695, %v1928_v62 }
 0x63c   : > { %2716 = vpow2.f32 %v1929_v55 }
 0x63d   : > { %2718 = vpow2.f32 %v1923_v54 }
 0x642   : > { %v2717_v3 = vpop.eup %2716 }
 0x643   : > { %v1932_v4 = vrot.slane %v2717_v3, 4  ;;  %v2719_v6 = vpop.eup %2718 }
 0x645   : > { %v1934_v7 = vadd.f32 %v2719_v6, %v1932_v4 }
 0x647   : > { %2720 = vrcp.f32 %v1934_v7 }
 0x64d   : > { %v2721_v9 = vpop.eup %2720 }
 0x64e   : > { %v1936_v57 = vmul.f32 %v2721_v9, %v2719_v6  ;;  %v1938_v14 = vrot.slane %v2721_v9, 4 }
 0x650   : > { %v1988_v10 = vperm.slane %v1936_v57, 3  ;;  %v1981_v11 = vperm.slane %v1936_v57, 2  ;;  %v1967_v13 = vperm.slane %v1936_v57, 0  ;;  %v1940_v15 = vmul.f32 %v2717_v3, %v1938_v14 }
 0x651   : > { %v1974_v45 = vperm.slane %v1936_v57, 1  ;;  %v1941_v21 = vadd.f32 1e-09, %v1936_v57 }
 0x652   : > { %1993 = vperm.xlu2 %2655, %v1988_v10   ;;  %1986 = vperm.xlu0 %2656, %v1981_v11   ;;  %v2020_v16 = vperm.slane %v1940_v15, 7  ;;  %v1945_v19 = vadd.f32 1e-09, %v1940_v15  ;;  %v1999_v20 = vperm.slane %v1940_v15, 4  ;;  %v2006_v22 = vperm.slane %v1940_v15, 5 }
 0x653   : > { %1972 = vperm.xlu1 %2654, %v1967_v13   ;;  %v2013_v25 = vperm.slane %v1940_v15, 6 }
 0x654   : > { %2722 = vlog2.f32 %v1945_v19 }
 0x655   : > { %2724 = vlog2.f32 %v1941_v21 }
 0x65a   : > { %1979 = vperm.xlu2 %2655, %v1974_v45   ;;  %v2723_v23 = vpop.eup %2722 }
 0x65b   : > { %2025 = vperm.xlu1 %2654, %v2020_v16   ;;  %v1947_v24 = vmul.f32 0.6931472, %v2723_v23  ;;  %v2725_v28 = vpop.eup %2724 }
 0x65c   : > { %v1943_v30 = vmul.f32 0.6931472, %v2725_v28 }
 0x65d   : > { %v1948_v29 = vmul.f32 %v1947_v24, %v1940_v15 }
 0x65e   : > { %v1944_v32 = vmul.f32 %v1943_v30, %v1936_v57  ;;  %v2728_v30 = vld [vmem:[%s2876_s26] sm:$0xff] }
 0x65f   : > { %v1950_v31 = vrot.slane %v1948_v29, 4 }
 0x661   : > { %v1952_v33 = vadd.f32 %v1950_v31, %v1944_v32 }
 0x662   : > { %2004 = vperm.xlu2 %2655, %v1999_v20  }
 0x663   : > { %2011 = vperm.xlu1 %2654, %v2006_v22   ;;  %v1953_v34 = vsub.f32 0.0, %v1952_v33  ;;  %v2671_v22 = vld [vmem:[%s3330_s15] ss:$0 sm:$0xff] }
 0x665   : > { %v1955_v35 = vsel %vm1954_vm14, %v1953_v34, 0.0 }
 0x66a   : > { %2018 = vperm.xlu2 %2655, %v2013_v25  }
 0x67c   : > { %1956 = vadd.xlane.f32.xlu0 %v1955_v35 }
 0x6ac   : > { %v1994_v17 = vpop.permute.xlu2 %1993 }
 0x6ad   : > { %v1998_v61 = vmul.f32 %v1994_v17, %v3170_v5  ;;  %v2624_v17 = vld [vmem:[%s3335_s20 + $0x18] sm:$0xff] }
 0x6ae   : > { %2247 = vmatpush.bf16.msrb.mxu0 %v2624_v17 }
 0x6b4   : > { %v1980_v42 = vpop.permute.xlu2 %1979 }
 0x6bc   : > { %v2005_v18 = vpop.permute.xlu2 %2004 }
 0x6bd   : > { %v2027_v1 = vmul.f32 %v2005_v18, %v3212_v56 }
 0x6c4   : > { %v1987_v46 = vpop.permute.xlu0 %1986  ;;  %v2019_v47 = vpop.permute.xlu2 %2018 }
 0x6c5   : > { %v1997_v49 = vmul.f32 %v1987_v46, %v3166_v58  ;;  %v2029_v50 = vmul.f32 %v2019_v47, %v3227_v26  ;;  %v1973_v0 = vpop.permute.xlu1 %1972 }
 0x6c6   : > { %v1995_v51 = vmul.f32 %v1973_v0, %v3153_v27  ;;  %v1996_v27 = vmul.f32 %v1980_v42, %v3155_v63  ;;  %v2623_v42 = vld [vmem:[%s3335_s20 + $0x10] sm:$0xff] }
 0x6c7   : > { %v2033_v52 = vadd.f32 %v2029_v50, %v1997_v49  ;;  %2248 = vmatpush.bf16.msrb.mxu0 %v2623_v42 }
 0x6c8   : > { %v2031_v2 = vadd.f32 %v2027_v1, %v1995_v51  ;;  %v2673_v51 = vld [vmem:[%s3332_s17] ss:$0 sm:$0xff] }
 0x6c9   : > { %v2037_v53 = vpack.c.bf16 %v2033_v52, %v2033_v52 }
 0x6ca   : > { %v2035_v59 = vpack.c.bf16 %v2031_v2, %v2031_v2 }
 0x6cb   : > { %2559 = vmatmul.msk.bf16.vlgmr.msra.gmra.mxu1 %vm1258_vm6, %v2037_v53 }
 0x6cc   : > { %2557 = vmatmul.msk.bf16.vlgmr.msrb.gmra.mxu3 %vm1258_vm6, %v2035_v59  ;;  %v2622_v59 = vld [vmem:[%s3335_s20 + $0x8] sm:$0xff] }
 0x6cd   : > { %v2026_v60 = vpop.permute.xlu1 %2025  ;;  %2249 = vmatpush.bf16.msrb.mxu0 %v2622_v59 }
 0x6ce   : > { %v2030_v58 = vmul.f32 %v2026_v60, %v3229_v48  ;;  %v2621_v60 = vld [vmem:[%s3335_s20] sm:$0xff] }
 0x6d0   : > { %v2034_v62 = vadd.f32 %v2030_v58, %v1998_v61  ;;  %v2674_v61 = vld [vmem:[%s3334_s19] ss:$0 sm:$0xff] }
 0x6d1   : > { %2250 = vmatpush.bf16.msrb.mxu0 %v2621_v60 }
 0x6d2   : > { %v2038_v26 = vpack.c.bf16 %v2034_v62, %v2034_v62 }
 0x6d4   : > { %2560 = vmatmul.msk.bf16.vlgmr.msra.gmra.mxu2 %vm1258_vm6, %v2038_v26 }
 0x6d5   : > { %v2012_v56 = vpop.permute.xlu1 %2011 }
 0x6d6   : > { %v2028_v54 = vmul.f32 %v2012_v56, %v3214_v12 }
 0x6d8   : > { %v2032_v55 = vadd.f32 %v2028_v54, %v1996_v27  ;;  %v2675_v54 = vld [vmem:[%s3336_s21] ss:$0 sm:$0xff] }
 0x6da   : > { %v2036_v3 = vpack.c.bf16 %v2032_v55, %v2032_v55 }
 0x6dc   : > { %2558 = vmatmul.msk.bf16.vlgmr.msra.gmra.mxu0 %vm1258_vm6, %v2036_v3 }
 0x6ef   : > { %v1957_v4 = vpop.xlane.xlu0 %1956 }
 0x6f0   : > { %v1958_v6 = vsel %vm1262_vm5, %v1957_v4, 0.0 }
 0x6f1   : > { %v1959_v5 = vrot.slane %v1958_v6, 4 }
 0x6f3   : > { %v1960_v7 = vadd.f32 %v1959_v5, %v1958_v6 }
 0x6f5   : > { %v1961_v48 = vrot.slane %v1960_v7, 2 }
 0x6f7   : > { %v1962_v9 = vadd.f32 %v1961_v48, %v1960_v7 }
 0x6f9   : > { %v1963_v57 = vrot.slane %v1962_v9, 1 }
 0x6fb   : > { %v1964_v63 = vadd.f32 %v1963_v57, %v1962_v9 }
 0x6fd   : > { %1966 = vst.msk [vmem:[%s802_s3] sm:$0x1] %vm1965_vm15, %v1964_v63 }
 0x748   : > { %v2096_v12 = vpop.f32.mrf.mxu1 }
 0x749   : > { %v2122_v20 = vsel %vm805_vm0, %v2096_v12, 0.0 }
 0x74f   : > { %v2058_v10 = vpop.f32.mrf.mxu3 }
 0x750   : > { %v2098_v11 = vpop.f32.mrf.mxu1  ;;  %v2119_v45 = vsel %vm805_vm0, %v2058_v10, 0.0 }
 0x757   : > { %v2060_v13 = vpop.f32.mrf.mxu3  ;;  %v2115_v14 = vpop.f32.mrf.mxu2 }
 0x758   : > { %v2124_v23 = vsel %vm805_vm0, %v2115_v14, 0.0 }
 0x759   : > { %v2077_v15 = vpop.f32.mrf.mxu0 }
 0x75a   : > { %v2120_v16 = vsel %vm805_vm0, %v2077_v15, 0.0 }
 0x75b   : > { %v2121_v19 = vadd.f32 %v2120_v16, %v2119_v45 }
 0x75d   : > { %v2123_v21 = vadd.f32 %v2122_v20, %v2121_v19 }
 0x75f   : > { %v2125_v24 = vadd.f32 %v2124_v23, %v2123_v21  ;;  %v2117_v25 = vpop.f32.mrf.mxu2 }
 0x761   : > { %v2079_v28 = vpop.f32.mrf.mxu0  ;;  %v2130_v29 = vadd.f32 %v2671_v22, %v2125_v24 }
 0x763   : > { %v2131_v31 = vadd.f32 %v2728_v30, %v2130_v29 }
 0x765   : > { %v2132_v32 = vsel %vm805_vm0, %v2131_v31, 0.0 }
 0x766   : > { %2133 = vadd.xlane.f32.xlu1 %v2132_v32 }
 0x7d9   : > { %v2134_v33 = vpop.xlane.xlu1 %2133 }
 0x7da   : > { %v2135_v34 = vmul.f32 %v2134_v33, %v2880_v8 }
 0x7dc   : > { %v2136_v35 = vsub.f32 %v2131_v31, %v2135_v34 }
 0x7de   : > { %v2137_v36 = vmul.f32 %v2136_v35, %v2136_v35 }
 0x7e0   : > { %v2138_v37 = vsel %vm805_vm0, %v2137_v36, 0.0 }
 0x7e1   : > { %2139 = vadd.xlane.f32.xlu2 %v2138_v37 }
 0x854   : > { %v2140_v40 = vpop.xlane.xlu2 %2139 }
 0x855   : > { %v2141_v41 = vmul.f32 %v2140_v40, %v2880_v8  ;;  %v2672_v8 = vld [vmem:[%s3331_s16] ss:$0 sm:$0xff] }
 0x857   : > { %v2142_v43 = vadd.f32 1e-06, %v2141_v41 }
 0x859   : > { %2726 = vrsqrt.f32 %v2142_v43  ;;  %vm2149_vm2 = vweird.f32 %v2142_v43 }
 0x85f   : > { %v2727_v44 = vpop.eup %2726 }
 0x860   : > { %v2144_v18 = vmul.f32 %v2727_v44, %v2142_v43  ;;  %vm2150_vm1 = vweird.f32 %v2727_v44 }
 0x861   : > { %vm2151_vm3 = vmor %vm2149_vm2, %vm2150_vm1 }
 0x862   : > { %v2145_v46 = vmul.f32 %v2727_v44, %v2144_v18 }
 0x864   : > { %v2146_v47 = vmul.f32 0.5, %v2145_v46 }
 0x866   : > { %v2147_v49 = vsub.f32 1.5, %v2146_v47 }
 0x868   : > { %v2148_v50 = vmul.f32 %v2727_v44, %v2147_v49 }
 0x86a   : > { %v2152_v0 = vsel %vm2151_vm3, %v2727_v44, %v2148_v50 }
 0x86b   : > { %v2153_v1 = vmul.f32 %v2152_v0, %v2136_v35 }
 0x86d   : > { %v2158_v52 = vmul.f32 %v2672_v8, %v2153_v1 }
 0x86f   : > { %v2163_v2 = vadd.f32 %v2673_v51, %v2158_v52 }
 0x871   : > { %v2164_v53 = vpack.c.bf16 %v2163_v2, %v2163_v2 }
 0x873   : > { %2569 = vmatmul.msk.bf16.vlgmr.msra.gmra.mxu3 %vm805_vm0, %v2164_v53 }
 0x8f6   : > { %v2197_v58 = vpop.f32.mrf.mxu3 }
 0x8f7   : > { %v2198_v62 = vadd.f32 %v2674_v61, %v2197_v58 }
 0x8f9   : > { %v2201_v26 = vmax.f32 %v2198_v62, 0.0 }
 0x8fb   : > { %v2202_v56 = vpack.c.bf16 %v2201_v26, %v2201_v26 }
 0x8fd   : > { %2586 = vmatmul.msk.bf16.vlgmr.msrb.gmra.mxu0 %vm2239_vm4, %v2202_v56 }
 0x8fe   : > { %v2199_v27 = vpop.f32.mrf.mxu3 }
 0x97a   : > { %v2252_v55 = vpop.f32.mrf.mxu0 }
 0x97b   : > { %v2253_v3 = vadd.f32 %v2675_v54, %v2252_v55 }
 0x97d   : > { %v2256_v4 = vadd.f32 %v2253_v3, %v2131_v31 }
 0x97f   : > { %2257 = vst.msk [vmem:[%s799_s25] sm:$0xff] %vm805_vm0, %v2256_v4 }
 0x982   : > { %v2254_v6 = vpop.f32.mrf.mxu0 }
 0x983 PF: > { %s34_s4 = sadd.s32 1, %s2735_s4  }
 0x984   : > { %p31_p4 = scmp.ge.s32.totalorder %s34_s4, 4  }
 0x986   :  { %33 = sbr.rel (!%p31_p4) target bundleno = 10 (0xa), region = 165 }

</bundles_post_ra>
